<compile_context>
chip_gen: v6e
topology: v6e:2x2x1
jax: 0.10.0
libtpu: 0.0.40
codegen_flags: <defaults>
</compile_context>

<pallas_src>
import functools
import numpy as np
import jax
import jax.numpy as jnp
from jax.experimental import pallas as pl
from jax.experimental.pallas import tpu as pltpu

# ----------------------------------------------------------------------------
# Static configuration (mirrors the PyTorch module __init__)
# ----------------------------------------------------------------------------
HIERARCHY_DICT = {
    65: [0, 1, 3, 6, 7, 8, 9, 10, 11, 13, 17, 18, 20, 22, 24, 25, 26, 28, 29, 30,
         31, 32, 33, 35, 36, 40, 41, 42, 44, 48, 49, 50, 52, 55, 56, 57, 58, 59,
         60, 62, 63, 67, 69, 72, 73, 75, 77, 79, 81, 82, 83, 84, 85, 86, 88, 89,
         90, 91, 93],
    66: [2, 4, 14, 15, 16, 19, 21, 23, 27, 34, 37, 38, 39, 43, 45, 46, 47, 51, 53,
         61, 64, 68, 70, 74, 76, 78, 80, 87, 92],
    20: [13, 36, 55], 33: [1, 10, 40, 85], 34: [2], 43: [92],
    57: [0, 30, 60, 79], 58: [22, 32, 69, 73], 56: [18, 82],
    77: [3, 7, 8, 9, 11, 24, 26, 28, 41, 42, 52, 62, 63, 75, 84, 86, 93],
    78: [4, 16, 27, 39, 46, 47, 51, 53, 64, 76, 87],
    81: [31], 3: [7, 26, 52, 62, 75, 84, 93],
    4: [27, 46, 47, 53, 64, 76], 22: [32], 69: [73], 70: [74],
    86: [24, 28, 63],
}
NUM_CLASSES = 94
EXCLUSIVE_CLASSES = [5, 12, 54, 65, 66, 71]
ALPHA, BETA, GAMMA = 0.1, 1.0, 2.0          # module defaults (gamma==2 -> fw*fw)
POS_MINING_THRESH, NEG_MINING_THRESH = 0.7, 0.3

P_OUT = 128            # lane-dense width of the parent-indexed matmul outputs
OUT_ROWS = 8           # merged per-block partial-sum output: [8, 128]
PAD_LOGIT = -1e4       # sigmoid == 0 and softplus == 0 exactly -> padded rows vanish
MAX_CHILD_EXTRACT = 4  # parents with <= this many descendants use lane slices
MAX_BATCH_TILE = 512


def _build_all_relationships(hierarchy_dict):
    """Transitive-closure descendants, identical to the PyTorch module."""
    def get_all_descendants(parent):
        descendants = set()
        if parent in hierarchy_dict:
            direct = hierarchy_dict[parent]
            descendants.update(direct)
            for child in direct:
                descendants.update(get_all_descendants(child))
        return descendants
    return {p: get_all_descendants(p) for p in hierarchy_dict}


def _build_structure():
    rels = _build_all_relationships(HIERARCHY_DICT)
    parents = list(rels.keys())                                    # 18 real parents
    parent_info = tuple((p, tuple(sorted(rels[p]))) for p in parents)
    n_par = len(parents)
    cmask = np.zeros((n_par, NUM_CLASSES), np.float32)             # [P, C] child mask
    ponehot_t = np.zeros((NUM_CLASSES, P_OUT), np.float32)         # [C, 128] parent 1-hot^T
    cmask_t = np.zeros((NUM_CLASSES, P_OUT), np.float32)           # [C, 128] child mask^T
    ex_mask = np.zeros((1, NUM_CLASSES), np.float32)
    for i, (p, children) in enumerate(parent_info):
        ponehot_t[p, i] = 1.0
        for c in children:
            cmask[i, c] = 1.0
            cmask_t[c, i] = 1.0
    ex_mask[0, EXCLUSIVE_CLASSES] = 1.0
    return (parent_info, jnp.asarray(cmask), jnp.asarray(ponehot_t),
            jnp.asarray(cmask_t), jnp.asarray(ex_mask))


PARENT_INFO, CMASK, PONEHOT_T, CMASK_T, EX_MASK = _build_structure()


# ----------------------------------------------------------------------------
# Pallas kernel: one batch tile -> one lane-dense [8, 128] block of partial sums
#   row 0: unweighted focal numerator per class   row 4: relu hierarchy partial
#   row 1: unweighted mined numerator per class   row 5: hierarchy numerator /parent
#   row 2: mining-mask count per class            row 6: hierarchy count /parent
#   row 3: exclusive-CE partial per class         row 7: positive count per class
# ----------------------------------------------------------------------------
def _hml_partial_kernel(ex_ref, cmask_ref, ponT_ref, cmT_ref,
                        pred_ref, targ_ref, out_ref,
                        *, b_tile, b_real, parent_info):
    C = pred_ref.shape[1]

    # Mask rows past the real batch BEFORE any transcendental: the last batch
    # block may be partial and its padding rows contain undefined data.
    row = (pl.program_id(0) * b_tile
           + jax.lax.broadcasted_iota(jnp.int32, (b_tile, 1), 0))
    valid = row < b_real                                           # [Bt, 1] bool
    x = jnp.where(valid, pred_ref[...], jnp.float32(PAD_LOGIT))
    t = jnp.where(valid, targ_ref[...], jnp.float32(0.0))
    em = ex_ref[...]                                               # [1, C]

    # one exp feeds both sigmoid and softplus (halves EUP traffic)
    e = jnp.exp(-jnp.abs(x))
    probs = jnp.where(x >= 0.0, 1.0, e) / (1.0 + e)                # sigmoid(x)
    softplus = jnp.maximum(x, 0.0) + jnp.log1p(e)                  # log(1 + e^x)

    # UNWEIGHTED BCE-with-logits + focal partial (summed over batch, per class)
    bce = softplus - x * t
    pt = t * probs + (1.0 - t) * (1.0 - probs)
    fw = 1.0 - pt                                                  # gamma == 2
    focal_row = jnp.sum(fw * fw * bce, axis=0, keepdims=True)      # [1, C]

    # hard-example-mining partials (unweighted numerator + count)
    hard_pos = (probs < POS_MINING_THRESH) & (t == 1.0)
    hard_neg = (probs > NEG_MINING_THRESH) & (t == 0.0)
    mmask = (hard_pos | hard_neg).astype(jnp.float32)
    mined_row = jnp.sum(bce * mmask, axis=0, keepdims=True)        # [1, C]
    mcnt_row = jnp.sum(mmask, axis=0, keepdims=True)               # [1, C]

    # positive counts per class (dynamic weights are applied in the wrapper)
    pos_row = jnp.sum(t, axis=0, keepdims=True)                    # [1, C]

    # exclusive-class soft-label cross entropy partial (per class)
    masked_x = jnp.where(em > 0.0, x, jnp.float32(-1e30))
    mx = jnp.max(masked_x, axis=1, keepdims=True)
    z = jnp.sum(jnp.exp(masked_x - mx), axis=1, keepdims=True)
    logsm = x - mx - jnp.log(z)                                    # valid at excl cols
    excl_row = jnp.sum(em * t * (-logsm), axis=0, keepdims=True)   # [1, C]

    # hierarchy part 1: relu(max child prob - parent prob), unrolled over the
    # 18 real parents. Parents with few descendants use direct lane slices;
    # the big ones use a masked lane-reduce. No [Bt, P, C] temp is ever built.
    relu_acc = jnp.zeros((b_tile, 1), jnp.float32)
    for i, (p, children) in enumerate(parent_info):
        if len(children) <= MAX_CHILD_EXTRACT:
            mc = probs[:, children[0]:children[0] + 1]
            for c in children[1:]:
                mc = jnp.maximum(mc, probs[:, c:c + 1])
        else:
            crow = cmask_ref[i:i + 1, :]                           # [1, C]
            mc = jnp.max(jnp.where(crow > 0.0, probs, -1.0),
                         axis=1, keepdims=True)                    # [Bt, 1]
        relu_acc = relu_acc + jnp.maximum(mc - probs[:, p:p + 1], 0.0)
    relu_part = jnp.sum(relu_acc, axis=0, keepdims=True)           # [1, 1]
    lane = jax.lax.broadcasted_iota(jnp.int32, (1, P_OUT), 1)
    relu_row = jnp.where(lane == 0, relu_part, 0.0)                # [1, 128]

    # hierarchy part 2: per-parent sum of child prob^2 over rows whose parent
    # target is 0. tp is exact at DEFAULT precision ({0,1} x one-hot); the
    # child-prob^2 gather keeps HIGHEST precision for accuracy.
    tp = jnp.dot(t, ponT_ref[...], preferred_element_type=jnp.float32)
    sq = jnp.dot(probs * probs, cmT_ref[...],
                 precision=jax.lax.Precision.HIGHEST,
                 preferred_element_type=jnp.float32)
    pmask = jnp.where(tp == 0.0, 1.0, 0.0) * valid.astype(jnp.float32)
    hnum_row = jnp.sum(pmask * sq, axis=0, keepdims=True)          # [1, 128]
    hcnt_row = jnp.sum(pmask, axis=0, keepdims=True)               # [1, 128]

    # single lane-dense [8, 128] partial-sum block -> one output DMA per step
    out_ref[...] = jnp.zeros_like(out_ref)
    out_ref[0:1, 0:C] = focal_row
    out_ref[1:2, 0:C] = mined_row
    out_ref[2:3, 0:C] = mcnt_row
    out_ref[3:4, 0:C] = excl_row
    out_ref[4:5, :] = relu_row
    out_ref[5:6, :] = hnum_row
    out_ref[6:7, :] = hcnt_row
    out_ref[7:8, 0:C] = pos_row


# ----------------------------------------------------------------------------
# Wrapper: batch grid, dynamic weights and the tiny final reduction in XLA
# ----------------------------------------------------------------------------
def _round_up(x, m):
    return ((x + m - 1) // m) * m


@jax.jit
def hierarchical_multilabel_loss(predictions, targets):
    B, C = predictions.shape
    predictions = predictions.astype(jnp.float32)
    targets = targets.astype(jnp.float32)

    # batch tile: <=512 rows, multiple of 8, and >=2 grid blocks whenever B
    # allows it so both v7x TensorCores get work on the "parallel" axis.
    bt = min(MAX_BATCH_TILE, max(8, _round_up(pl.cdiv(B, 2), 8)))
    nblk = pl.cdiv(B, bt)

    kernel = functools.partial(_hml_partial_kernel, b_tile=bt, b_real=B,
                               parent_info=PARENT_INFO)
    const_spec = lambda a: pl.BlockSpec(a.shape, lambda i: (0, 0))

    partials = pl.pallas_call(
        kernel,
        grid=(nblk,),
        in_specs=[
            const_spec(EX_MASK),                              # [1, 94]
            const_spec(CMASK),                                # [18, 94]
            const_spec(PONEHOT_T),                            # [94, 128]
            const_spec(CMASK_T),                              # [94, 128]
            pl.BlockSpec((bt, C), lambda i: (i, 0)),          # logits  [B, 94]
            pl.BlockSpec((bt, C), lambda i: (i, 0)),          # targets [B, 94]
        ],
        out_specs=pl.BlockSpec((None, OUT_ROWS, P_OUT), lambda i: (i, 0, 0)),
        out_shape=jax.ShapeDtypeStruct((nblk, OUT_ROWS, P_OUT), jnp.float32),
        compiler_params=pltpu.CompilerParams(
            dimension_semantics=("parallel",)),
    )(EX_MASK, CMASK, PONEHOT_T, CMASK_T, predictions, targets)

    sums = jnp.sum(partials, axis=0)                          # [8, 128]
    focal_u = sums[0, :C]
    mined_u = sums[1, :C]
    mined_cnt = jnp.sum(sums[2, :C])
    excl_sum = jnp.sum(sums[3, :C])
    relu_sum = sums[4, 0]
    hnum = sums[5]
    hcnt = sums[6]
    pos = sums[7, :C]

    # dynamic class weights (class_weights buffer == ones); exactly separable:
    # focal = sum_c w_c * sum_b fw^2*bce, mined_num = sum_c w_c * sum_b bce*mask
    dyn_w = jnp.where(pos > 0, (B - pos) / jnp.maximum(pos, 1.0), jnp.float32(10.0))

    focal_loss = jnp.sum(focal_u * dyn_w) / (B * C)
    mined_loss = jnp.sum(mined_u * dyn_w) / (mined_cnt + 1e-6)
    exclusive_loss = excl_sum / B
    masked_term = jnp.sum(jnp.where(hcnt > 0, hnum / jnp.maximum(hcnt, 1.0), 0.0))
    hierarchy_loss = relu_sum / B + masked_term
    # TODO(synk): the stochastic host-side debug print (np.random.random() < 0.1)
    # in the PyTorch forward is a host side-effect and is intentionally omitted.
    return (0.4 * focal_loss + 0.4 * mined_loss
            + ALPHA * hierarchy_loss + BETA * exclusive_loss)


# ----------------------------------------------------------------------------
# Pure-JAX reference (mirrors the PyTorch forward) for a sanity check
# ----------------------------------------------------------------------------
def reference_loss(predictions, targets):
    rels = _build_all_relationships(HIERARCHY_DICT)
    B = targets.shape[0]
    pos_counts = targets.sum(axis=0)
    neg_counts = B - pos_counts
    dyn_w = jnp.where(pos_counts > 0, neg_counts / jnp.maximum(pos_counts, 1.0), 10.0)
    comb_w = jnp.ones(NUM_CLASSES, jnp.float32) * dyn_w
    probs = jax.nn.sigmoid(predictions)
    pt = targets * probs + (1 - targets) * (1 - probs)
    focal_w = (1 - pt) ** GAMMA
    bce = jax.nn.softplus(predictions) - predictions * targets
    wbce = bce * comb_w[None, :]
    focal_loss = jnp.mean(focal_w * wbce)
    hard_pos = (probs < POS_MINING_THRESH) & (targets == 1)
    hard_neg = (probs > NEG_MINING_THRESH) & (targets == 0)
    mmask = (hard_pos | hard_neg).astype(jnp.float32)
    mined_loss = jnp.sum(wbce * mmask) / (jnp.sum(mmask) + 1e-6)
    h_loss = jnp.float32(0.0)
    for parent, desc in rels.items():
        idx = sorted(desc)
        parent_probs = probs[:, parent]
        child_probs = probs[:, idx]
        max_child = jnp.max(child_probs, axis=1)
        h_loss = h_loss + jnp.mean(jax.nn.relu(max_child - parent_probs))
        pmask = (targets[:, parent] == 0).astype(jnp.float32)
        cnt = jnp.sum(pmask)
        sq_sum = jnp.sum(child_probs ** 2, axis=1)
        h_loss = h_loss + jnp.where(cnt > 0,
                                    jnp.sum(pmask * sq_sum) / jnp.maximum(cnt, 1.0), 0.0)
    ex_logits = predictions[:, jnp.array(EXCLUSIVE_CLASSES)]
    ex_targets = targets[:, jnp.array(EXCLUSIVE_CLASSES)]
    logsm = jax.nn.log_softmax(ex_logits, axis=1)
    exclusive_loss = jnp.mean(-jnp.sum(ex_targets * logsm, axis=1))
    return 0.4 * focal_loss + 0.4 * mined_loss + ALPHA * h_loss + BETA * exclusive_loss


# ----------------------------------------------------------------------------
if __name__ == "__main__":
    key = jax.random.PRNGKey(0)
    # B=16: two even batch blocks; B=20: exercises a partial (masked) last block.
    for B in (16, 20):
        key, k1, k2 = jax.random.split(key, 3)
        predictions = jax.random.normal(k1, (B, NUM_CLASSES), dtype=jnp.float32)
        targets = jax.random.bernoulli(k2, 0.3, (B, NUM_CLASSES)).astype(jnp.float32)

        loss = jax.block_until_ready(hierarchical_multilabel_loss(predictions, targets))
        ref = jax.block_until_ready(reference_loss(predictions, targets))
        np.testing.assert_allclose(np.array(loss), np.array(ref), rtol=2e-3, atol=2e-3)

    print("KERNEL_OK")
</pallas_src>

<mosaic_0001>
module attributes {stable_mosaic.version = 11 : i64} {
  func.func @_hml_partial_kernel(%arg0: i32, %arg1: memref<1x94xf32, #tpu.memory_space<vmem>>, %arg2: memref<18x94xf32, #tpu.memory_space<vmem>>, %arg3: memref<94x128xf32, #tpu.memory_space<vmem>>, %arg4: memref<94x128xf32, #tpu.memory_space<vmem>>, %arg5: memref<8x94xf32, #tpu.memory_space<vmem>>, %arg6: memref<8x94xf32, #tpu.memory_space<vmem>>, %arg7: memref<1x8x128xf32, #tpu.memory_space<vmem>>) attributes {dimension_semantics = [#tpu.dimension_semantics<parallel>], iteration_bounds = array<i64: 2>, scalar_prefetch = 0 : i64, scratch_operands = 0 : i64, tpu.core_type = #tpu.core_type<tc>, window_params = [{pipeline_mode = #tpu.pipeline_mode<synchronous>, transform_indices = @transform_0, window_bounds = array<i64: 1, 94>}, {pipeline_mode = #tpu.pipeline_mode<synchronous>, transform_indices = @transform_1, window_bounds = array<i64: 18, 94>}, {pipeline_mode = #tpu.pipeline_mode<synchronous>, transform_indices = @transform_2, window_bounds = array<i64: 94, 128>}, {pipeline_mode = #tpu.pipeline_mode<synchronous>, transform_indices = @transform_3, window_bounds = array<i64: 94, 128>}, {transform_indices = @transform_4, window_bounds = array<i64: 8, 94>}, {transform_indices = @transform_5, window_bounds = array<i64: 8, 94>}, {transform_indices = @transform_6, window_bounds = array<i64: 1, 8, 128>}]} {
    %c8_i32 = arith.constant 8 : i32
    %0 = arith.muli %arg0, %c8_i32 : i32
    %1 = tpu.iota {dimensions = array<i32: 0>} : vector<8x1xi32>
    %2 = vector.broadcast %0 : i32 to vector<8x1xi32>
    %3 = arith.addi %2, %1 : vector<8x1xi32>
    %c16_i32 = arith.constant 16 : i32
    %4 = vector.broadcast %c16_i32 : i32 to vector<8x1xi32>
    %5 = arith.cmpi slt, %3, %4 : vector<8x1xi32>
    %c0 = arith.constant 0 : index
    %c0_0 = arith.constant 0 : index
    %6 = vector.load %arg5[%c0, %c0_0] : memref<8x94xf32, #tpu.memory_space<vmem>>, vector<8x94xf32>
    %cst = arith.constant -1.000000e+04 : f32
    %7 = vector.shape_cast %5 : vector<8x1xi1> to vector<8x1xi1>
    %8 = vector.broadcast %7 : vector<8x1xi1> to vector<8x94xi1>
    %9 = vector.broadcast %cst : f32 to vector<8x94xf32>
    %10 = arith.select %8, %6, %9 : vector<8x94xi1>, vector<8x94xf32>
    %c0_1 = arith.constant 0 : index
    %c0_2 = arith.constant 0 : index
    %11 = vector.load %arg6[%c0_1, %c0_2] : memref<8x94xf32, #tpu.memory_space<vmem>>, vector<8x94xf32>
    %cst_3 = arith.constant 0.000000e+00 : f32
    %12 = vector.shape_cast %5 : vector<8x1xi1> to vector<8x1xi1>
    %13 = vector.broadcast %12 : vector<8x1xi1> to vector<8x94xi1>
    %14 = vector.broadcast %cst_3 : f32 to vector<8x94xf32>
    %15 = arith.select %13, %11, %14 : vector<8x94xi1>, vector<8x94xf32>
    %c0_4 = arith.constant 0 : index
    %c0_5 = arith.constant 0 : index
    %16 = vector.load %arg1[%c0_4, %c0_5] : memref<1x94xf32, #tpu.memory_space<vmem>>, vector<1x94xf32>
    %17 = math.absf %10 : vector<8x94xf32>
    %cst_6 = arith.constant 0.000000e+00 : f32
    %18 = vector.broadcast %cst_6 : f32 to vector<8x94xf32>
    %19 = arith.subf %18, %17 : vector<8x94xf32>
    %20 = math.exp %19 : vector<8x94xf32>
    %cst_7 = arith.constant 0.000000e+00 : f32
    %21 = vector.broadcast %cst_7 : f32 to vector<8x94xf32>
    %22 = arith.cmpf oge, %10, %21 : vector<8x94xf32>
    %cst_8 = arith.constant 1.000000e+00 : f32
    %23 = vector.broadcast %cst_8 : f32 to vector<8x94xf32>
    %24 = arith.select %22, %23, %20 : vector<8x94xi1>, vector<8x94xf32>
    %cst_9 = arith.constant 1.000000e+00 : f32
    %25 = vector.broadcast %cst_9 : f32 to vector<8x94xf32>
    %26 = arith.addf %25, %20 : vector<8x94xf32>
    %27 = arith.divf %24, %26 : vector<8x94xf32>
    %cst_10 = arith.constant 0.000000e+00 : f32
    %28 = vector.broadcast %cst_10 : f32 to vector<8x94xf32>
    %29 = arith.maximumf %10, %28 : vector<8x94xf32>
    %30 = math.log1p %20 : vector<8x94xf32>
    %31 = arith.addf %29, %30 : vector<8x94xf32>
    %32 = arith.mulf %10, %15 : vector<8x94xf32>
    %33 = arith.subf %31, %32 : vector<8x94xf32>
    %34 = arith.mulf %15, %27 : vector<8x94xf32>
    %cst_11 = arith.constant 1.000000e+00 : f32
    %35 = vector.broadcast %cst_11 : f32 to vector<8x94xf32>
    %36 = arith.subf %35, %15 : vector<8x94xf32>
    %cst_12 = arith.constant 1.000000e+00 : f32
    %37 = vector.broadcast %cst_12 : f32 to vector<8x94xf32>
    %38 = arith.subf %37, %27 : vector<8x94xf32>
    %39 = arith.mulf %36, %38 : vector<8x94xf32>
    %40 = arith.addf %34, %39 : vector<8x94xf32>
    %cst_13 = arith.constant 1.000000e+00 : f32
    %41 = vector.broadcast %cst_13 : f32 to vector<8x94xf32>
    %42 = arith.subf %41, %40 : vector<8x94xf32>
    %43 = arith.mulf %42, %42 : vector<8x94xf32>
    %44 = arith.mulf %43, %33 : vector<8x94xf32>
    %cst_14 = arith.constant dense<0.000000e+00> : vector<94xf32>
    %45 = vector.multi_reduction <add>, %44, %cst_14 [0] : vector<8x94xf32> to vector<94xf32>
    %46 = vector.shape_cast %45 : vector<94xf32> to vector<1x94xf32>
    %cst_15 = arith.constant 0.699999988 : f32
    %47 = vector.broadcast %cst_15 : f32 to vector<8x94xf32>
    %48 = arith.cmpf olt, %27, %47 : vector<8x94xf32>
    %cst_16 = arith.constant 1.000000e+00 : f32
    %49 = vector.broadcast %cst_16 : f32 to vector<8x94xf32>
    %50 = arith.cmpf oeq, %15, %49 : vector<8x94xf32>
    %51 = arith.andi %48, %50 : vector<8x94xi1>
    %cst_17 = arith.constant 3.000000e-01 : f32
    %52 = vector.broadcast %cst_17 : f32 to vector<8x94xf32>
    %53 = arith.cmpf ogt, %27, %52 : vector<8x94xf32>
    %cst_18 = arith.constant 0.000000e+00 : f32
    %54 = vector.broadcast %cst_18 : f32 to vector<8x94xf32>
    %55 = arith.cmpf oeq, %15, %54 : vector<8x94xf32>
    %56 = arith.andi %53, %55 : vector<8x94xi1>
    %57 = arith.ori %51, %56 : vector<8x94xi1>
    %58 = arith.extui %57 : vector<8x94xi1> to vector<8x94xi32>
    %59 = arith.sitofp %58 : vector<8x94xi32> to vector<8x94xf32>
    %60 = arith.mulf %33, %59 : vector<8x94xf32>
    %cst_19 = arith.constant dense<0.000000e+00> : vector<94xf32>
    %61 = vector.multi_reduction <add>, %60, %cst_19 [0] : vector<8x94xf32> to vector<94xf32>
    %62 = vector.shape_cast %61 : vector<94xf32> to vector<1x94xf32>
    %cst_20 = arith.constant dense<0.000000e+00> : vector<94xf32>
    %63 = vector.multi_reduction <add>, %59, %cst_20 [0] : vector<8x94xf32> to vector<94xf32>
    %64 = vector.shape_cast %63 : vector<94xf32> to vector<1x94xf32>
    %cst_21 = arith.constant dense<0.000000e+00> : vector<94xf32>
    %65 = vector.multi_reduction <add>, %15, %cst_21 [0] : vector<8x94xf32> to vector<94xf32>
    %66 = vector.shape_cast %65 : vector<94xf32> to vector<1x94xf32>
    %cst_22 = arith.constant 0.000000e+00 : f32
    %67 = vector.broadcast %cst_22 : f32 to vector<1x94xf32>
    %68 = arith.cmpf ogt, %16, %67 : vector<1x94xf32>
    %cst_23 = arith.constant -1.000000e+30 : f32
    %69 = vector.shape_cast %68 : vector<1x94xi1> to vector<1x94xi1>
    %70 = vector.broadcast %69 : vector<1x94xi1> to vector<8x94xi1>
    %71 = vector.broadcast %cst_23 : f32 to vector<8x94xf32>
    %72 = arith.select %70, %10, %71 : vector<8x94xi1>, vector<8x94xf32>
    %cst_24 = arith.constant dense<0xFF800000> : vector<8xf32>
    %73 = vector.multi_reduction <maximumf>, %72, %cst_24 [1] : vector<8x94xf32> to vector<8xf32>
    %74 = vector.shape_cast %73 : vector<8xf32> to vector<8x1xf32>
    %75 = vector.broadcast %74 : vector<8x1xf32> to vector<8x94xf32>
    %76 = arith.subf %72, %75 : vector<8x94xf32>
    %77 = math.exp %76 : vector<8x94xf32>
    %cst_25 = arith.constant dense<0.000000e+00> : vector<8xf32>
    %78 = vector.multi_reduction <add>, %77, %cst_25 [1] : vector<8x94xf32> to vector<8xf32>
    %79 = vector.shape_cast %78 : vector<8xf32> to vector<8x1xf32>
    %80 = vector.broadcast %74 : vector<8x1xf32> to vector<8x94xf32>
    %81 = arith.subf %10, %80 : vector<8x94xf32>
    %82 = math.log %79 : vector<8x1xf32>
    %83 = vector.broadcast %82 : vector<8x1xf32> to vector<8x94xf32>
    %84 = arith.subf %81, %83 : vector<8x94xf32>
    %85 = vector.broadcast %16 : vector<1x94xf32> to vector<8x94xf32>
    %86 = arith.mulf %85, %15 : vector<8x94xf32>
    %cst_26 = arith.constant 0.000000e+00 : f32
    %87 = vector.broadcast %cst_26 : f32 to vector<8x94xf32>
    %88 = arith.subf %87, %84 : vector<8x94xf32>
    %89 = arith.mulf %86, %88 : vector<8x94xf32>
    %cst_27 = arith.constant dense<0.000000e+00> : vector<94xf32>
    %90 = vector.multi_reduction <add>, %89, %cst_27 [0] : vector<8x94xf32> to vector<94xf32>
    %91 = vector.shape_cast %90 : vector<94xf32> to vector<1x94xf32>
    %cst_28 = arith.constant 0.000000e+00 : f32
    %92 = vector.broadcast %cst_28 : f32 to vector<8x1xf32>
    %c0_29 = arith.constant 0 : index
    %c0_30 = arith.constant 0 : index
    %93 = vector.load %arg2[%c0_29, %c0_30] : memref<18x94xf32, #tpu.memory_space<vmem>>, vector<1x94xf32>
    %cst_31 = arith.constant 0.000000e+00 : f32
    %94 = vector.broadcast %cst_31 : f32 to vector<1x94xf32>
    %95 = arith.cmpf ogt, %93, %94 : vector<1x94xf32>
    %cst_32 = arith.constant -1.000000e+00 : f32
    %96 = vector.shape_cast %95 : vector<1x94xi1> to vector<1x94xi1>
    %97 = vector.broadcast %96 : vector<1x94xi1> to vector<8x94xi1>
    %98 = vector.broadcast %cst_32 : f32 to vector<8x94xf32>
    %99 = arith.select %97, %27, %98 : vector<8x94xi1>, vector<8x94xf32>
    %cst_33 = arith.constant dense<0xFF800000> : vector<8xf32>
    %100 = vector.multi_reduction <maximumf>, %99, %cst_33 [1] : vector<8x94xf32> to vector<8xf32>
    %101 = vector.shape_cast %100 : vector<8xf32> to vector<8x1xf32>
    %102 = vector.extract_strided_slice %27 {offsets = [0, 65], sizes = [8, 1], strides = [1, 1]} : vector<8x94xf32> to vector<8x1xf32>
    %103 = arith.subf %101, %102 : vector<8x1xf32>
    %cst_34 = arith.constant 0.000000e+00 : f32
    %104 = vector.broadcast %cst_34 : f32 to vector<8x1xf32>
    %105 = arith.maximumf %103, %104 : vector<8x1xf32>
    %106 = arith.addf %92, %105 : vector<8x1xf32>
    %c1 = arith.constant 1 : index
    %c0_35 = arith.constant 0 : index
    %107 = vector.load %arg2[%c1, %c0_35] : memref<18x94xf32, #tpu.memory_space<vmem>>, vector<1x94xf32>
    %cst_36 = arith.constant 0.000000e+00 : f32
    %108 = vector.broadcast %cst_36 : f32 to vector<1x94xf32>
    %109 = arith.cmpf ogt, %107, %108 : vector<1x94xf32>
    %cst_37 = arith.constant -1.000000e+00 : f32
    %110 = vector.shape_cast %109 : vector<1x94xi1> to vector<1x94xi1>
    %111 = vector.broadcast %110 : vector<1x94xi1> to vector<8x94xi1>
    %112 = vector.broadcast %cst_37 : f32 to vector<8x94xf32>
    %113 = arith.select %111, %27, %112 : vector<8x94xi1>, vector<8x94xf32>
    %cst_38 = arith.constant dense<0xFF800000> : vector<8xf32>
    %114 = vector.multi_reduction <maximumf>, %113, %cst_38 [1] : vector<8x94xf32> to vector<8xf32>
    %115 = vector.shape_cast %114 : vector<8xf32> to vector<8x1xf32>
    %116 = vector.extract_strided_slice %27 {offsets = [0, 66], sizes = [8, 1], strides = [1, 1]} : vector<8x94xf32> to vector<8x1xf32>
    %117 = arith.subf %115, %116 : vector<8x1xf32>
    %cst_39 = arith.constant 0.000000e+00 : f32
    %118 = vector.broadcast %cst_39 : f32 to vector<8x1xf32>
    %119 = arith.maximumf %117, %118 : vector<8x1xf32>
    %120 = arith.addf %106, %119 : vector<8x1xf32>
    %121 = vector.extract_strided_slice %27 {offsets = [0, 13], sizes = [8, 1], strides = [1, 1]} : vector<8x94xf32> to vector<8x1xf32>
    %122 = vector.extract_strided_slice %27 {offsets = [0, 36], sizes = [8, 1], strides = [1, 1]} : vector<8x94xf32> to vector<8x1xf32>
    %123 = arith.maximumf %121, %122 : vector<8x1xf32>
    %124 = vector.extract_strided_slice %27 {offsets = [0, 55], sizes = [8, 1], strides = [1, 1]} : vector<8x94xf32> to vector<8x1xf32>
    %125 = arith.maximumf %123, %124 : vector<8x1xf32>
    %126 = vector.extract_strided_slice %27 {offsets = [0, 20], sizes = [8, 1], strides = [1, 1]} : vector<8x94xf32> to vector<8x1xf32>
    %127 = arith.subf %125, %126 : vector<8x1xf32>
    %cst_40 = arith.constant 0.000000e+00 : f32
    %128 = vector.broadcast %cst_40 : f32 to vector<8x1xf32>
    %129 = arith.maximumf %127, %128 : vector<8x1xf32>
    %130 = arith.addf %120, %129 : vector<8x1xf32>
    %131 = vector.extract_strided_slice %27 {offsets = [0, 1], sizes = [8, 1], strides = [1, 1]} : vector<8x94xf32> to vector<8x1xf32>
    %132 = vector.extract_strided_slice %27 {offsets = [0, 10], sizes = [8, 1], strides = [1, 1]} : vector<8x94xf32> to vector<8x1xf32>
    %133 = arith.maximumf %131, %132 : vector<8x1xf32>
    %134 = vector.extract_strided_slice %27 {offsets = [0, 40], sizes = [8, 1], strides = [1, 1]} : vector<8x94xf32> to vector<8x1xf32>
    %135 = arith.maximumf %133, %134 : vector<8x1xf32>
    %136 = vector.extract_strided_slice %27 {offsets = [0, 85], sizes = [8, 1], strides = [1, 1]} : vector<8x94xf32> to vector<8x1xf32>
    %137 = arith.maximumf %135, %136 : vector<8x1xf32>
    %138 = vector.extract_strided_slice %27 {offsets = [0, 33], sizes = [8, 1], strides = [1, 1]} : vector<8x94xf32> to vector<8x1xf32>
    %139 = arith.subf %137, %138 : vector<8x1xf32>
    %cst_41 = arith.constant 0.000000e+00 : f32
    %140 = vector.broadcast %cst_41 : f32 to vector<8x1xf32>
    %141 = arith.maximumf %139, %140 : vector<8x1xf32>
    %142 = arith.addf %130, %141 : vector<8x1xf32>
    %143 = vector.extract_strided_slice %27 {offsets = [0, 2], sizes = [8, 1], strides = [1, 1]} : vector<8x94xf32> to vector<8x1xf32>
    %144 = vector.extract_strided_slice %27 {offsets = [0, 34], sizes = [8, 1], strides = [1, 1]} : vector<8x94xf32> to vector<8x1xf32>
    %145 = arith.subf %143, %144 : vector<8x1xf32>
    %cst_42 = arith.constant 0.000000e+00 : f32
    %146 = vector.broadcast %cst_42 : f32 to vector<8x1xf32>
    %147 = arith.maximumf %145, %146 : vector<8x1xf32>
    %148 = arith.addf %142, %147 : vector<8x1xf32>
    %149 = vector.extract_strided_slice %27 {offsets = [0, 92], sizes = [8, 1], strides = [1, 1]} : vector<8x94xf32> to vector<8x1xf32>
    %150 = vector.extract_strided_slice %27 {offsets = [0, 43], sizes = [8, 1], strides = [1, 1]} : vector<8x94xf32> to vector<8x1xf32>
    %151 = arith.subf %149, %150 : vector<8x1xf32>
    %cst_43 = arith.constant 0.000000e+00 : f32
    %152 = vector.broadcast %cst_43 : f32 to vector<8x1xf32>
    %153 = arith.maximumf %151, %152 : vector<8x1xf32>
    %154 = arith.addf %148, %153 : vector<8x1xf32>
    %155 = vector.extract_strided_slice %27 {offsets = [0, 0], sizes = [8, 1], strides = [1, 1]} : vector<8x94xf32> to vector<8x1xf32>
    %156 = vector.extract_strided_slice %27 {offsets = [0, 30], sizes = [8, 1], strides = [1, 1]} : vector<8x94xf32> to vector<8x1xf32>
    %157 = arith.maximumf %155, %156 : vector<8x1xf32>
    %158 = vector.extract_strided_slice %27 {offsets = [0, 60], sizes = [8, 1], strides = [1, 1]} : vector<8x94xf32> to vector<8x1xf32>
    %159 = arith.maximumf %157, %158 : vector<8x1xf32>
    %160 = vector.extract_strided_slice %27 {offsets = [0, 79], sizes = [8, 1], strides = [1, 1]} : vector<8x94xf32> to vector<8x1xf32>
    %161 = arith.maximumf %159, %160 : vector<8x1xf32>
    %162 = vector.extract_strided_slice %27 {offsets = [0, 57], sizes = [8, 1], strides = [1, 1]} : vector<8x94xf32> to vector<8x1xf32>
    %163 = arith.subf %161, %162 : vector<8x1xf32>
    %cst_44 = arith.constant 0.000000e+00 : f32
    %164 = vector.broadcast %cst_44 : f32 to vector<8x1xf32>
    %165 = arith.maximumf %163, %164 : vector<8x1xf32>
    %166 = arith.addf %154, %165 : vector<8x1xf32>
    %167 = vector.extract_strided_slice %27 {offsets = [0, 22], sizes = [8, 1], strides = [1, 1]} : vector<8x94xf32> to vector<8x1xf32>
    %168 = vector.extract_strided_slice %27 {offsets = [0, 32], sizes = [8, 1], strides = [1, 1]} : vector<8x94xf32> to vector<8x1xf32>
    %169 = arith.maximumf %167, %168 : vector<8x1xf32>
    %170 = vector.extract_strided_slice %27 {offsets = [0, 69], sizes = [8, 1], strides = [1, 1]} : vector<8x94xf32> to vector<8x1xf32>
    %171 = arith.maximumf %169, %170 : vector<8x1xf32>
    %172 = vector.extract_strided_slice %27 {offsets = [0, 73], sizes = [8, 1], strides = [1, 1]} : vector<8x94xf32> to vector<8x1xf32>
    %173 = arith.maximumf %171, %172 : vector<8x1xf32>
    %174 = vector.extract_strided_slice %27 {offsets = [0, 58], sizes = [8, 1], strides = [1, 1]} : vector<8x94xf32> to vector<8x1xf32>
    %175 = arith.subf %173, %174 : vector<8x1xf32>
    %cst_45 = arith.constant 0.000000e+00 : f32
    %176 = vector.broadcast %cst_45 : f32 to vector<8x1xf32>
    %177 = arith.maximumf %175, %176 : vector<8x1xf32>
    %178 = arith.addf %166, %177 : vector<8x1xf32>
    %179 = vector.extract_strided_slice %27 {offsets = [0, 18], sizes = [8, 1], strides = [1, 1]} : vector<8x94xf32> to vector<8x1xf32>
    %180 = vector.extract_strided_slice %27 {offsets = [0, 82], sizes = [8, 1], strides = [1, 1]} : vector<8x94xf32> to vector<8x1xf32>
    %181 = arith.maximumf %179, %180 : vector<8x1xf32>
    %182 = vector.extract_strided_slice %27 {offsets = [0, 56], sizes = [8, 1], strides = [1, 1]} : vector<8x94xf32> to vector<8x1xf32>
    %183 = arith.subf %181, %182 : vector<8x1xf32>
    %cst_46 = arith.constant 0.000000e+00 : f32
    %184 = vector.broadcast %cst_46 : f32 to vector<8x1xf32>
    %185 = arith.maximumf %183, %184 : vector<8x1xf32>
    %186 = arith.addf %178, %185 : vector<8x1xf32>
    %c9 = arith.constant 9 : index
    %c0_47 = arith.constant 0 : index
    %187 = vector.load %arg2[%c9, %c0_47] : memref<18x94xf32, #tpu.memory_space<vmem>>, vector<1x94xf32>
    %cst_48 = arith.constant 0.000000e+00 : f32
    %188 = vector.broadcast %cst_48 : f32 to vector<1x94xf32>
    %189 = arith.cmpf ogt, %187, %188 : vector<1x94xf32>
    %cst_49 = arith.constant -1.000000e+00 : f32
    %190 = vector.shape_cast %189 : vector<1x94xi1> to vector<1x94xi1>
    %191 = vector.broadcast %190 : vector<1x94xi1> to vector<8x94xi1>
    %192 = vector.broadcast %cst_49 : f32 to vector<8x94xf32>
    %193 = arith.select %191, %27, %192 : vector<8x94xi1>, vector<8x94xf32>
    %cst_50 = arith.constant dense<0xFF800000> : vector<8xf32>
    %194 = vector.multi_reduction <maximumf>, %193, %cst_50 [1] : vector<8x94xf32> to vector<8xf32>
    %195 = vector.shape_cast %194 : vector<8xf32> to vector<8x1xf32>
    %196 = vector.extract_strided_slice %27 {offsets = [0, 77], sizes = [8, 1], strides = [1, 1]} : vector<8x94xf32> to vector<8x1xf32>
    %197 = arith.subf %195, %196 : vector<8x1xf32>
    %cst_51 = arith.constant 0.000000e+00 : f32
    %198 = vector.broadcast %cst_51 : f32 to vector<8x1xf32>
    %199 = arith.maximumf %197, %198 : vector<8x1xf32>
    %200 = arith.addf %186, %199 : vector<8x1xf32>
    %c10 = arith.constant 10 : index
    %c0_52 = arith.constant 0 : index
    %201 = vector.load %arg2[%c10, %c0_52] : memref<18x94xf32, #tpu.memory_space<vmem>>, vector<1x94xf32>
    %cst_53 = arith.constant 0.000000e+00 : f32
    %202 = vector.broadcast %cst_53 : f32 to vector<1x94xf32>
    %203 = arith.cmpf ogt, %201, %202 : vector<1x94xf32>
    %cst_54 = arith.constant -1.000000e+00 : f32
    %204 = vector.shape_cast %203 : vector<1x94xi1> to vector<1x94xi1>
    %205 = vector.broadcast %204 : vector<1x94xi1> to vector<8x94xi1>
    %206 = vector.broadcast %cst_54 : f32 to vector<8x94xf32>
    %207 = arith.select %205, %27, %206 : vector<8x94xi1>, vector<8x94xf32>
    %cst_55 = arith.constant dense<0xFF800000> : vector<8xf32>
    %208 = vector.multi_reduction <maximumf>, %207, %cst_55 [1] : vector<8x94xf32> to vector<8xf32>
    %209 = vector.shape_cast %208 : vector<8xf32> to vector<8x1xf32>
    %210 = vector.extract_strided_slice %27 {offsets = [0, 78], sizes = [8, 1], strides = [1, 1]} : vector<8x94xf32> to vector<8x1xf32>
    %211 = arith.subf %209, %210 : vector<8x1xf32>
    %cst_56 = arith.constant 0.000000e+00 : f32
    %212 = vector.broadcast %cst_56 : f32 to vector<8x1xf32>
    %213 = arith.maximumf %211, %212 : vector<8x1xf32>
    %214 = arith.addf %200, %213 : vector<8x1xf32>
    %215 = vector.extract_strided_slice %27 {offsets = [0, 31], sizes = [8, 1], strides = [1, 1]} : vector<8x94xf32> to vector<8x1xf32>
    %216 = vector.extract_strided_slice %27 {offsets = [0, 81], sizes = [8, 1], strides = [1, 1]} : vector<8x94xf32> to vector<8x1xf32>
    %217 = arith.subf %215, %216 : vector<8x1xf32>
    %cst_57 = arith.constant 0.000000e+00 : f32
    %218 = vector.broadcast %cst_57 : f32 to vector<8x1xf32>
    %219 = arith.maximumf %217, %218 : vector<8x1xf32>
    %220 = arith.addf %214, %219 : vector<8x1xf32>
    %c12 = arith.constant 12 : index
    %c0_58 = arith.constant 0 : index
    %221 = vector.load %arg2[%c12, %c0_58] : memref<18x94xf32, #tpu.memory_space<vmem>>, vector<1x94xf32>
    %cst_59 = arith.constant 0.000000e+00 : f32
    %222 = vector.broadcast %cst_59 : f32 to vector<1x94xf32>
    %223 = arith.cmpf ogt, %221, %222 : vector<1x94xf32>
    %cst_60 = arith.constant -1.000000e+00 : f32
    %224 = vector.shape_cast %223 : vector<1x94xi1> to vector<1x94xi1>
    %225 = vector.broadcast %224 : vector<1x94xi1> to vector<8x94xi1>
    %226 = vector.broadcast %cst_60 : f32 to vector<8x94xf32>
    %227 = arith.select %225, %27, %226 : vector<8x94xi1>, vector<8x94xf32>
    %cst_61 = arith.constant dense<0xFF800000> : vector<8xf32>
    %228 = vector.multi_reduction <maximumf>, %227, %cst_61 [1] : vector<8x94xf32> to vector<8xf32>
    %229 = vector.shape_cast %228 : vector<8xf32> to vector<8x1xf32>
    %230 = vector.extract_strided_slice %27 {offsets = [0, 3], sizes = [8, 1], strides = [1, 1]} : vector<8x94xf32> to vector<8x1xf32>
    %231 = arith.subf %229, %230 : vector<8x1xf32>
    %cst_62 = arith.constant 0.000000e+00 : f32
    %232 = vector.broadcast %cst_62 : f32 to vector<8x1xf32>
    %233 = arith.maximumf %231, %232 : vector<8x1xf32>
    %234 = arith.addf %220, %233 : vector<8x1xf32>
    %c13 = arith.constant 13 : index
    %c0_63 = arith.constant 0 : index
    %235 = vector.load %arg2[%c13, %c0_63] : memref<18x94xf32, #tpu.memory_space<vmem>>, vector<1x94xf32>
    %cst_64 = arith.constant 0.000000e+00 : f32
    %236 = vector.broadcast %cst_64 : f32 to vector<1x94xf32>
    %237 = arith.cmpf ogt, %235, %236 : vector<1x94xf32>
    %cst_65 = arith.constant -1.000000e+00 : f32
    %238 = vector.shape_cast %237 : vector<1x94xi1> to vector<1x94xi1>
    %239 = vector.broadcast %238 : vector<1x94xi1> to vector<8x94xi1>
    %240 = vector.broadcast %cst_65 : f32 to vector<8x94xf32>
    %241 = arith.select %239, %27, %240 : vector<8x94xi1>, vector<8x94xf32>
    %cst_66 = arith.constant dense<0xFF800000> : vector<8xf32>
    %242 = vector.multi_reduction <maximumf>, %241, %cst_66 [1] : vector<8x94xf32> to vector<8xf32>
    %243 = vector.shape_cast %242 : vector<8xf32> to vector<8x1xf32>
    %244 = vector.extract_strided_slice %27 {offsets = [0, 4], sizes = [8, 1], strides = [1, 1]} : vector<8x94xf32> to vector<8x1xf32>
    %245 = arith.subf %243, %244 : vector<8x1xf32>
    %cst_67 = arith.constant 0.000000e+00 : f32
    %246 = vector.broadcast %cst_67 : f32 to vector<8x1xf32>
    %247 = arith.maximumf %245, %246 : vector<8x1xf32>
    %248 = arith.addf %234, %247 : vector<8x1xf32>
    %249 = vector.extract_strided_slice %27 {offsets = [0, 32], sizes = [8, 1], strides = [1, 1]} : vector<8x94xf32> to vector<8x1xf32>
    %250 = vector.extract_strided_slice %27 {offsets = [0, 22], sizes = [8, 1], strides = [1, 1]} : vector<8x94xf32> to vector<8x1xf32>
    %251 = arith.subf %249, %250 : vector<8x1xf32>
    %cst_68 = arith.constant 0.000000e+00 : f32
    %252 = vector.broadcast %cst_68 : f32 to vector<8x1xf32>
    %253 = arith.maximumf %251, %252 : vector<8x1xf32>
    %254 = arith.addf %248, %253 : vector<8x1xf32>
    %255 = vector.extract_strided_slice %27 {offsets = [0, 73], sizes = [8, 1], strides = [1, 1]} : vector<8x94xf32> to vector<8x1xf32>
    %256 = vector.extract_strided_slice %27 {offsets = [0, 69], sizes = [8, 1], strides = [1, 1]} : vector<8x94xf32> to vector<8x1xf32>
    %257 = arith.subf %255, %256 : vector<8x1xf32>
    %cst_69 = arith.constant 0.000000e+00 : f32
    %258 = vector.broadcast %cst_69 : f32 to vector<8x1xf32>
    %259 = arith.maximumf %257, %258 : vector<8x1xf32>
    %260 = arith.addf %254, %259 : vector<8x1xf32>
    %261 = vector.extract_strided_slice %27 {offsets = [0, 74], sizes = [8, 1], strides = [1, 1]} : vector<8x94xf32> to vector<8x1xf32>
    %262 = vector.extract_strided_slice %27 {offsets = [0, 70], sizes = [8, 1], strides = [1, 1]} : vector<8x94xf32> to vector<8x1xf32>
    %263 = arith.subf %261, %262 : vector<8x1xf32>
    %cst_70 = arith.constant 0.000000e+00 : f32
    %264 = vector.broadcast %cst_70 : f32 to vector<8x1xf32>
    %265 = arith.maximumf %263, %264 : vector<8x1xf32>
    %266 = arith.addf %260, %265 : vector<8x1xf32>
    %267 = vector.extract_strided_slice %27 {offsets = [0, 24], sizes = [8, 1], strides = [1, 1]} : vector<8x94xf32> to vector<8x1xf32>
    %268 = vector.extract_strided_slice %27 {offsets = [0, 28], sizes = [8, 1], strides = [1, 1]} : vector<8x94xf32> to vector<8x1xf32>
    %269 = arith.maximumf %267, %268 : vector<8x1xf32>
    %270 = vector.extract_strided_slice %27 {offsets = [0, 63], sizes = [8, 1], strides = [1, 1]} : vector<8x94xf32> to vector<8x1xf32>
    %271 = arith.maximumf %269, %270 : vector<8x1xf32>
    %272 = vector.extract_strided_slice %27 {offsets = [0, 86], sizes = [8, 1], strides = [1, 1]} : vector<8x94xf32> to vector<8x1xf32>
    %273 = arith.subf %271, %272 : vector<8x1xf32>
    %cst_71 = arith.constant 0.000000e+00 : f32
    %274 = vector.broadcast %cst_71 : f32 to vector<8x1xf32>
    %275 = arith.maximumf %273, %274 : vector<8x1xf32>
    %276 = arith.addf %266, %275 : vector<8x1xf32>
    %cst_72 = arith.constant dense<0.000000e+00> : vector<1xf32>
    %277 = vector.multi_reduction <add>, %276, %cst_72 [0] : vector<8x1xf32> to vector<1xf32>
    %278 = vector.shape_cast %277 : vector<1xf32> to vector<1x1xf32>
    %279 = tpu.iota {dimensions = array<i32: 1>} : vector<1x128xi32>
    %c0_i32 = arith.constant 0 : i32
    %280 = vector.broadcast %c0_i32 : i32 to vector<1x128xi32>
    %281 = arith.cmpi eq, %279, %280 : vector<1x128xi32>
    %cst_73 = arith.constant 0.000000e+00 : f32
    %282 = vector.shape_cast %278 : vector<1x1xf32> to vector<1x1xf32>
    %283 = vector.broadcast %282 : vector<1x1xf32> to vector<1x128xf32>
    %284 = vector.broadcast %cst_73 : f32 to vector<1x128xf32>
    %285 = arith.select %281, %283, %284 : vector<1x128xi1>, vector<1x128xf32>
    %c0_74 = arith.constant 0 : index
    %c0_75 = arith.constant 0 : index
    %286 = vector.load %arg3[%c0_74, %c0_75] : memref<94x128xf32, #tpu.memory_space<vmem>>, vector<94x128xf32>
    %cst_76 = arith.constant dense<0.000000e+00> : vector<8x128xf32>
    %287 = tpu.matmul %15, %286, %cst_76 {dimension_numbers = #tpu.dot_dimension_numbers<[1], [0], [0], [1], [0, 0, 1, 1], [], []>} : vector<8x94xf32>, vector<94x128xf32>, vector<8x128xf32> -> vector<8x128xf32>
    %288 = arith.mulf %27, %27 : vector<8x94xf32>
    %c0_77 = arith.constant 0 : index
    %c0_78 = arith.constant 0 : index
    %289 = vector.load %arg4[%c0_77, %c0_78] : memref<94x128xf32, #tpu.memory_space<vmem>>, vector<94x128xf32>
    %cst_79 = arith.constant dense<0.000000e+00> : vector<8x128xf32>
    %290 = tpu.matmul %288, %289, %cst_79 {dimension_numbers = #tpu.dot_dimension_numbers<[1], [0], [0], [1], [0, 0, 1, 1], [], []>, precision = #tpu.contract_precision<fp32>} : vector<8x94xf32>, vector<94x128xf32>, vector<8x128xf32> -> vector<8x128xf32>
    %cst_80 = arith.constant 0.000000e+00 : f32
    %291 = vector.broadcast %cst_80 : f32 to vector<8x128xf32>
    %292 = arith.cmpf oeq, %287, %291 : vector<8x128xf32>
    %cst_81 = arith.constant 1.000000e+00 : f32
    %cst_82 = arith.constant 0.000000e+00 : f32
    %293 = vector.broadcast %cst_81 : f32 to vector<8x128xf32>
    %294 = vector.broadcast %cst_82 : f32 to vector<8x128xf32>
    %295 = arith.select %292, %293, %294 : vector<8x128xi1>, vector<8x128xf32>
    %296 = arith.extui %5 : vector<8x1xi1> to vector<8x1xi32>
    %297 = arith.sitofp %296 : vector<8x1xi32> to vector<8x1xf32>
    %298 = vector.broadcast %297 : vector<8x1xf32> to vector<8x128xf32>
    %299 = arith.mulf %295, %298 : vector<8x128xf32>
    %300 = arith.mulf %299, %290 : vector<8x128xf32>
    %cst_83 = arith.constant dense<0.000000e+00> : vector<128xf32>
    %301 = vector.multi_reduction <add>, %300, %cst_83 [0] : vector<8x128xf32> to vector<128xf32>
    %302 = vector.shape_cast %301 : vector<128xf32> to vector<1x128xf32>
    %cst_84 = arith.constant dense<0.000000e+00> : vector<128xf32>
    %303 = vector.multi_reduction <add>, %299, %cst_84 [0] : vector<8x128xf32> to vector<128xf32>
    %304 = vector.shape_cast %303 : vector<128xf32> to vector<1x128xf32>
    %cst_85 = arith.constant 0.000000e+00 : f32
    %305 = vector.broadcast %cst_85 : f32 to vector<8x128xf32>
    %c0_86 = arith.constant 0 : index
    %c0_87 = arith.constant 0 : index
    %c0_88 = arith.constant 0 : index
    %306 = vector.load %arg7[%c0_86, %c0_87, %c0_88] : memref<1x8x128xf32, #tpu.memory_space<vmem>>, vector<1x8x128xf32>
    %307 = vector.shape_cast %306 : vector<1x8x128xf32> to vector<8x128xf32>
    %308 = vector.shape_cast %305 : vector<8x128xf32> to vector<1x8x128xf32>
    tpu.vector_store %arg7[%c0_86, %c0_87, %c0_88], %308 {strides = array<i32>} : memref<1x8x128xf32, #tpu.memory_space<vmem>>, vector<1x8x128xf32>,
    %c0_89 = arith.constant 0 : index
    %c0_90 = arith.constant 0 : index
    %c0_91 = arith.constant 0 : index
    %309 = vector.load %arg7[%c0_89, %c0_90, %c0_91] : memref<1x8x128xf32, #tpu.memory_space<vmem>>, vector<1x1x94xf32>
    %310 = vector.shape_cast %309 : vector<1x1x94xf32> to vector<1x94xf32>
    %311 = vector.shape_cast %46 : vector<1x94xf32> to vector<1x1x94xf32>
    tpu.vector_store %arg7[%c0_89, %c0_90, %c0_91], %311 {strides = array<i32>} : memref<1x8x128xf32, #tpu.memory_space<vmem>>, vector<1x1x94xf32>,
    %c0_92 = arith.constant 0 : index
    %c1_93 = arith.constant 1 : index
    %c0_94 = arith.constant 0 : index
    %312 = vector.load %arg7[%c0_92, %c1_93, %c0_94] : memref<1x8x128xf32, #tpu.memory_space<vmem>>, vector<1x1x94xf32>
    %313 = vector.shape_cast %312 : vector<1x1x94xf32> to vector<1x94xf32>
    %314 = vector.shape_cast %62 : vector<1x94xf32> to vector<1x1x94xf32>
    tpu.vector_store %arg7[%c0_92, %c1_93, %c0_94], %314 {strides = array<i32>} : memref<1x8x128xf32, #tpu.memory_space<vmem>>, vector<1x1x94xf32>,
    %c0_95 = arith.constant 0 : index
    %c2 = arith.constant 2 : index
    %c0_96 = arith.constant 0 : index
    %315 = vector.load %arg7[%c0_95, %c2, %c0_96] : memref<1x8x128xf32, #tpu.memory_space<vmem>>, vector<1x1x94xf32>
    %316 = vector.shape_cast %315 : vector<1x1x94xf32> to vector<1x94xf32>
    %317 = vector.shape_cast %64 : vector<1x94xf32> to vector<1x1x94xf32>
    tpu.vector_store %arg7[%c0_95, %c2, %c0_96], %317 {strides = array<i32>} : memref<1x8x128xf32, #tpu.memory_space<vmem>>, vector<1x1x94xf32>,
    %c0_97 = arith.constant 0 : index
    %c3 = arith.constant 3 : index
    %c0_98 = arith.constant 0 : index
    %318 = vector.load %arg7[%c0_97, %c3, %c0_98] : memref<1x8x128xf32, #tpu.memory_space<vmem>>, vector<1x1x94xf32>
    %319 = vector.shape_cast %318 : vector<1x1x94xf32> to vector<1x94xf32>
    %320 = vector.shape_cast %91 : vector<1x94xf32> to vector<1x1x94xf32>
    tpu.vector_store %arg7[%c0_97, %c3, %c0_98], %320 {strides = array<i32>} : memref<1x8x128xf32, #tpu.memory_space<vmem>>, vector<1x1x94xf32>,
    %c0_99 = arith.constant 0 : index
    %c4 = arith.constant 4 : index
    %c0_100 = arith.constant 0 : index
    %321 = vector.load %arg7[%c0_99, %c4, %c0_100] : memref<1x8x128xf32, #tpu.memory_space<vmem>>, vector<1x1x128xf32>
    %322 = vector.shape_cast %321 : vector<1x1x128xf32> to vector<1x128xf32>
    %323 = vector.shape_cast %285 : vector<1x128xf32> to vector<1x1x128xf32>
    tpu.vector_store %arg7[%c0_99, %c4, %c0_100], %323 {strides = array<i32>} : memref<1x8x128xf32, #tpu.memory_space<vmem>>, vector<1x1x128xf32>,
    %c0_101 = arith.constant 0 : index
    %c5 = arith.constant 5 : index
    %c0_102 = arith.constant 0 : index
    %324 = vector.load %arg7[%c0_101, %c5, %c0_102] : memref<1x8x128xf32, #tpu.memory_space<vmem>>, vector<1x1x128xf32>
    %325 = vector.shape_cast %324 : vector<1x1x128xf32> to vector<1x128xf32>
    %326 = vector.shape_cast %302 : vector<1x128xf32> to vector<1x1x128xf32>
    tpu.vector_store %arg7[%c0_101, %c5, %c0_102], %326 {strides = array<i32>} : memref<1x8x128xf32, #tpu.memory_space<vmem>>, vector<1x1x128xf32>,
    %c0_103 = arith.constant 0 : index
    %c6 = arith.constant 6 : index
    %c0_104 = arith.constant 0 : index
    %327 = vector.load %arg7[%c0_103, %c6, %c0_104] : memref<1x8x128xf32, #tpu.memory_space<vmem>>, vector<1x1x128xf32>
    %328 = vector.shape_cast %327 : vector<1x1x128xf32> to vector<1x128xf32>
    %329 = vector.shape_cast %304 : vector<1x128xf32> to vector<1x1x128xf32>
    tpu.vector_store %arg7[%c0_103, %c6, %c0_104], %329 {strides = array<i32>} : memref<1x8x128xf32, #tpu.memory_space<vmem>>, vector<1x1x128xf32>,
    %c0_105 = arith.constant 0 : index
    %c7 = arith.constant 7 : index
    %c0_106 = arith.constant 0 : index
    %330 = vector.load %arg7[%c0_105, %c7, %c0_106] : memref<1x8x128xf32, #tpu.memory_space<vmem>>, vector<1x1x94xf32>
    %331 = vector.shape_cast %330 : vector<1x1x94xf32> to vector<1x94xf32>
    %332 = vector.shape_cast %66 : vector<1x94xf32> to vector<1x1x94xf32>
    tpu.vector_store %arg7[%c0_105, %c7, %c0_106], %332 {strides = array<i32>} : memref<1x8x128xf32, #tpu.memory_space<vmem>>, vector<1x1x94xf32>,
    return
  }
  func.func @transform_0(%arg0: i32) -> (i32, i32) {
    %c0_i32 = arith.constant 0 : i32
    %c0_i32_0 = arith.constant 0 : i32
    %c0_i32_1 = arith.constant 0 : i32
    return %c0_i32, %c0_i32_0 : i32, i32
  }
  func.func @transform_1(%arg0: i32) -> (i32, i32) {
    %c0_i32 = arith.constant 0 : i32
    %c0_i32_0 = arith.constant 0 : i32
    %c0_i32_1 = arith.constant 0 : i32
    return %c0_i32, %c0_i32_0 : i32, i32
  }
  func.func @transform_2(%arg0: i32) -> (i32, i32) {
    %c0_i32 = arith.constant 0 : i32
    %c0_i32_0 = arith.constant 0 : i32
    %c0_i32_1 = arith.constant 0 : i32
    return %c0_i32, %c0_i32_0 : i32, i32
  }
  func.func @transform_3(%arg0: i32) -> (i32, i32) {
    %c0_i32 = arith.constant 0 : i32
    %c0_i32_0 = arith.constant 0 : i32
    %c0_i32_1 = arith.constant 0 : i32
    return %c0_i32, %c0_i32_0 : i32, i32
  }
  func.func @transform_4(%arg0: i32) -> (i32, i32) {
    %c0_i32 = arith.constant 0 : i32
    %c0_i32_0 = arith.constant 0 : i32
    return %arg0, %c0_i32 : i32, i32
  }
  func.func @transform_5(%arg0: i32) -> (i32, i32) {
    %c0_i32 = arith.constant 0 : i32
    %c0_i32_0 = arith.constant 0 : i32
    return %arg0, %c0_i32 : i32, i32
  }
  func.func @transform_6(%arg0: i32) -> (i32, i32, i32) {
    %c0_i32 = arith.constant 0 : i32
    %c0_i32_0 = arith.constant 0 : i32
    %c0_i32_1 = arith.constant 0 : i32
    return %arg0, %c0_i32, %c0_i32_0 : i32, i32, i32
  }
}

</mosaic_0001>

<bundles_post_ra>
// kernel: hierarchical_multilabel_loss.1
= control target key start
LH: loop header
LB: loop body
LE: loop exit
PB: predicated region body
PF: predicated region fallthrough
CT: control target
= control target key end

     0   :  { %11 = vsyncpa [#allocation3], 0  ;;  %s3000_s0 = inlined_call_operand.vmem [shape: f32[1,94], index: 0, kind: input, shape index: {}]   ;;  %s3001_s1 = inlined_call_operand.hbm [shape: f32[18,94], index: 1, kind: input, shape index: {}]   ;;  %s3002_s2 = inlined_call_operand.hbm [shape: f32[94,128], index: 2, kind: input, shape index: {}]   ;;  %s3003_s3 = inlined_call_operand.hbm [shape: f32[94,128], index: 3, kind: input, shape index: {}]   ;;  %s3004_s4 = inlined_call_operand.hbm [shape: f32[16,94], index: 4, kind: input, shape index: {}]   ;;  %s3005_s5 = inlined_call_operand.hbm [shape: f32[16,94], index: 5, kind: input, shape index: {}]   ;;  %s3006_s6 = inlined_call_operand.vmem [shape: f32[2,8,128], index: 6, kind: output, shape index: {}]  }
   0x1   :  { %12 = vsyncpa [#allocation5], 0 }
   0x2   :  { %13 = vsyncpa [#allocation8], 0 }
   0x3   :  { %15 = vsyncpa [#allocation8 + $0x1], 0  ;;  %s2287_s21 = smov 0   ;;  %s2289_s22 = smov 0  }
   0x4   :  { %s2291_s23 = smov 0   ;;  %s2293_s24 = smov 0  }
   0x5 LB: > { %s2306_s25 = sadd.s32 4294967295, %s2202_s24   ;;  %p125_p0 = scmp.ne.s32.totalorder %s2194_s22, %s2190_s21  ;;  %s2202_s24 = sphi %s2293_s24, %s3051_s24   ;;  %s2198_s23 = sphi %s2291_s23, %s3050_s23   ;;  %s2194_s22 = sphi %s2289_s22, %s3049_s22   ;;  %s2190_s21 = sphi %s2287_s21, %s3048_s21  }
   0x6   : > { %p3011_p1 = scmp.eq.s32.totalorder %s2306_s25, 0  ;;  %p1594_p2 = scmp.ge.s32.totalorder %s2202_s24, 1 }
   0x7   : > { %p188_p3 = scmp.lt.s32.totalorder %s2202_s24, 3  ;;  %s2204_s28 = smov [#allocation4]  }
   0x8   : > { %p2314_p4 = por %p3011_p1, %p125_p0  ;;  %s216_s29 = sshll.u32 %s2204_s28, 4  ;;  %s217_s29 = int_to_ptr.vmem [resolvable:$true] %s216_s29 }
   0x9   : > { %p2318_p5 = pnand %p1594_p2, %p188_p3  ;;  %s2331_s7 = sadd.s32 1, %s2202_s24  }
   0xa   : > { %s3017_s26 = scalar_select %p2314_p4, 1, 0 }
   0xb   : > { %s3018_s27 = scalar_select %p2318_p5, 1, 0 }
   0xc   : > { %p1913_p6 = pneg %p2318_p5  ;;  %s112_s8 = sadd.s32 1, %s2198_s23 }
   0xd   : > { %s109_s9 = ssub.s32 %s2202_s24, %s2331_s7  ;;  %s2037_s10 = scalar_lea.vmem %s217_s29, 1536 }
   0xe   : > { %p2326_p7 = pnand %p1913_p6, %p3011_p1  ;;  %p2038_p9 = scmp.ne.s32.totalorder %s217_s29, %s2037_s10 }
   0xf   : > { %p2045_p12 = scmp.lt.s32.totalorder %s217_s29, %s217_s29  ;;  %p2046_p13 = scmp.lt.s32.totalorder %s2037_s10, %s2037_s10 }
  0x10   : > { %s3019_s30 = scalar_select %p2326_p7, 1, 0 }
  0x11   : > { %p3012_p8 = pneg %p2326_p7  ;;  %p2047_p0 = por %p2046_p13, %p2045_p12 }
  0x13   : > { %p2040_p10 = pnand %p2038_p9, %p3012_p8 }
  0x15   : > { %p2041_p11 = pneg %p2040_p10 }
  0x17   : > { %p2048_p2 = pnand %p2047_p0, %p2041_p11 }
  0x19   : > { %2051 = shalt.err (!%p2048_p2)
}
  0x1a   : > { %s3007_s11 = smov 128   ;;  %s3009_s12 = smov 8  }
  0x1b   : > { %1919 = dma.hbm_to_vmem [thread:$0]  (!%p2326_p7), %s3002_s2, 1536, %s217_s29, [#allocation5], %s3007_s11, %s3007_s11, %s3009_s12  }
  0x1c   : > { %p110_p3 = scmp.eq.s32.totalorder %s109_s9, 0  ;;  %p119_p6 = scmp.ne.s32.totalorder %s2198_s23, %s2194_s22 }
  0x1d   : > { %p120_p9 = scmp.eq.s32.totalorder %s2202_s24, 0  ;;  %p1933_p10 = scmp.lt.s32.totalorder %s2202_s24, 2 }
  0x1e   : > { %s2354_s15 = scalar_select %p110_p3, %s2198_s23, %s112_s8  }
  0x1f   : > { %p121_p11 = por %p120_p9, %p119_p6  ;;  %s243_s16 = sand.u32 1, %s2202_s24  }
  0x20   : > { %s245_s17 = sand.u32 1, %s2198_s23   ;;  %s1600_s19 = sshll.u32 %s2202_s24, 7 }
  0x21   : > { %s2358_s18 = sshll.u32 %s245_s17, 3  ;;  %s2364_s28 = scalar_lea.hbm %s3004_s4, %s1600_s19 }
  0x22   : > { %s247_s29 = scalar_lea.vmem [#allocation7], %s2358_s18  ;;  %p2367_p12 = pnand %p1933_p10, %p121_p11 }
  0x23   : > { %s254_s9 = sshll.u32 %s247_s29, 4  ;;  %s2374_s24 = scalar_lea.hbm %s3005_s5, %s1600_s19  ;;  %s255_s9 = int_to_ptr.vmem [resolvable:$true] %s254_s9 }
  0x24   : > { %s2376_s14 = scalar_lea.sflag [#allocation8], %s243_s16  ;;  %s2052_s17 = scalar_lea.hbm %s2364_s28, 128 }
  0x25   : > { %p2053_p13 = scmp.ne.s32.totalorder %s2364_s28, %s2052_s17  ;;  %p2054_p0 = pneg %p2367_p12 }
  0x26   : > { %s2057_s29 = scalar_lea.hbm %s3004_s4, 256  ;;  %p2058_p6 = scmp.lt.s32.totalorder %s2364_s28, %s3004_s4 }
  0x27   : > { %p2055_p2 = pnand %p2054_p0, %p2053_p13  ;;  %p2059_p9 = scmp.lt.s32.totalorder %s2057_s29, %s2052_s17 }
  0x29   : > { %p2056_p3 = pneg %p2055_p2  ;;  %p2060_p10 = por %p2059_p9, %p2058_p6 }
  0x2b   : > { %p2061_p11 = pnand %p2060_p10, %p2056_p3 }
  0x2d   : > { %2064 = shalt.err (!%p2061_p11)
}
  0x2e   : > { %s2065_s16 = scalar_lea.vmem %s255_s9, 128  ;;  %s2207_s19 = smov [#allocation7]  }
  0x2f   : > { %p2066_p1 = scmp.ne.s32.totalorder %s255_s9, %s2065_s16  ;;  %s2070_s10 = sshll.u32 %s2207_s19, 4  ;;  %s2071_s10 = int_to_ptr.vmem [resolvable:$false] %s2070_s10 }
  0x30   : > { %s2072_s13 = scalar_lea.vmem %s2071_s10, 256  ;;  %p2073_p2 = scmp.lt.s32.totalorder %s255_s9, %s2071_s10 }
  0x31   : > { %p2068_p8 = pnand %p2066_p1, %p2054_p0  ;;  %p2074_p4 = scmp.lt.s32.totalorder %s2072_s13, %s2065_s16 }
  0x33   : > { %p2069_p13 = pneg %p2068_p8  ;;  %p2075_p5 = por %p2074_p4, %p2073_p2 }
  0x35   : > { %p2076_p7 = pnand %p2075_p5, %p2069_p13 }
  0x37   : > { %2079 = shalt.err (!%p2076_p7)
}
  0x38   : > { %1926 = dma.hbm_to_vmem [thread:$0]  (!%p2367_p12), %s2364_s28, 128, %s255_s9, %s2376_s14  }
  0x39   : > { %s2208_s11 = smov [#allocation2]   ;;  %s2209_s17 = smov [#allocation6]  }
  0x3a   : > { %s203_s12 = sshll.u32 %s2208_s11, 4  ;;  %s229_s20 = sshll.u32 %s2209_s17, 4  ;;  %s204_s12 = int_to_ptr.vmem [resolvable:$true] %s203_s12  ;;  %s230_s20 = int_to_ptr.vmem [resolvable:$true] %s229_s20 }
  0x3b   : > { %s2091_s21 = scalar_lea.vmem %s204_s12, 384  ;;  %p3021_p8 = scmp.ne.s32.totalorder %s3019_s30, 0 }
  0x3c   : > { %p2092_p1 = scmp.ne.s32.totalorder %s204_s12, %s2091_s21  ;;  %p2099_p5 = scmp.lt.s32.totalorder %s204_s12, %s204_s12 }
  0x3d   : > { %p3022_p3 = pneg %p3021_p8  ;;  %p2100_p7 = scmp.lt.s32.totalorder %s2091_s21, %s2091_s21 }
  0x3f   : > { %p2094_p6 = pnand %p2092_p1, %p3022_p3  ;;  %p2101_p9 = por %p2100_p7, %p2099_p5 }
  0x41   : > { %p2095_p4 = pneg %p2094_p6 }
  0x43   : > { %p2102_p10 = pnand %p2101_p9, %p2095_p4 }
  0x45   : > { %2105 = shalt.err (!%p2102_p10)
}
  0x46   : > { %s3023_s28 = smov 8   ;;  %s3024_s9 = smov 128  }
  0x47   : > { %1916 = dma.hbm_to_vmem [thread:$0]  (!%p3021_p8), %s3001_s1, 384, %s204_s12, [#allocation3], %s3024_s9, %s3024_s9, %s3023_s28  }
  0x48   : > { %s2117_s19 = scalar_lea.vmem %s230_s20, 1536  ;;  %p3025_p13 = pmov %p3022_p3 }
  0x49   : > { %p2118_p11 = scmp.ne.s32.totalorder %s230_s20, %s2117_s19  ;;  %p2125_p3 = scmp.lt.s32.totalorder %s230_s20, %s230_s20 }
  0x4a   : > { %p2126_p6 = scmp.lt.s32.totalorder %s2117_s19, %s2117_s19 }
  0x4b   : > { %p2120_p2 = pnand %p2118_p11, %p3025_p13 }
  0x4c   : > { %p2127_p4 = por %p2126_p6, %p2125_p3 }
  0x4d   : > { %p2121_p1 = pneg %p2120_p2 }
  0x4f   : > { %p2128_p5 = pnand %p2127_p4, %p2121_p1 }
  0x51   : > { %2131 = shalt.err (!%p2128_p5)
}
  0x52   : > { %1922 = dma.hbm_to_vmem [thread:$0]  (!%p3021_p8), %s3003_s3, 1536, %s230_s20, [#allocation5], %s3024_s9, %s3024_s9, %s3023_s28  }
  0x53   : > { %s265_s11 = scalar_lea.vmem [#allocation9], %s2358_s18  ;;  %s2132_s17 = scalar_lea.hbm %s2374_s24, 128 }
  0x54   : > { %s272_s12 = sshll.u32 %s265_s11, 4  ;;  %p2133_p7 = scmp.ne.s32.totalorder %s2374_s24, %s2132_s17  ;;  %s273_s12 = int_to_ptr.vmem [resolvable:$true] %s272_s12 }
  0x55   : > { %s2137_s29 = scalar_lea.hbm %s3005_s5, 256  ;;  %p2138_p11 = scmp.lt.s32.totalorder %s2374_s24, %s3005_s5 }
  0x56   : > { %p2135_p9 = pnand %p2133_p7, %p2054_p0  ;;  %p2139_p13 = scmp.lt.s32.totalorder %s2137_s29, %s2132_s17 }
  0x58   : > { %p2136_p10 = pneg %p2135_p9  ;;  %p2140_p2 = por %p2139_p13, %p2138_p11 }
  0x5a   : > { %p2141_p8 = pnand %p2140_p2, %p2136_p10 }
  0x5c   : > { %2144 = shalt.err (!%p2141_p8)
}
  0x5d   : > { %s2145_s18 = scalar_lea.vmem %s273_s12, 128  ;;  %s2210_s20 = smov [#allocation9]  }
  0x5e   : > { %p2146_p1 = scmp.ne.s32.totalorder %s273_s12, %s2145_s18  ;;  %s2150_s28 = sshll.u32 %s2210_s20, 4  ;;  %s2151_s28 = int_to_ptr.vmem [resolvable:$false] %s2150_s28 }
  0x5f   : > { %s2152_s9 = scalar_lea.vmem %s2151_s28, 256  ;;  %p2153_p4 = scmp.lt.s32.totalorder %s273_s12, %s2151_s28 }
  0x60   : > { %p2148_p3 = pnand %p2146_p1, %p2054_p0  ;;  %p2154_p5 = scmp.lt.s32.totalorder %s2152_s9, %s2145_s18 }
  0x62   : > { %p2149_p6 = pneg %p2148_p3  ;;  %p2155_p7 = por %p2154_p5, %p2153_p4 }
  0x64   : > { %p2156_p9 = pnand %p2155_p7, %p2149_p6 }
  0x66   : > { %2159 = shalt.err (!%p2156_p9)
}
  0x67   : > { %1929 = dma.hbm_to_vmem [thread:$0]  (!%p2367_p12), %s2374_s24, 128, %s273_s12, %s2376_s14  }
  0x68   : > { %p3026_p10 = scmp.ne.s32.totalorder %s3018_s27, 0 }
  0x69   : > { %p3027_p0 = scmp.eq.s32.totalorder (!%p3026_p10), %s2306_s25, 0 }
  0x6a   : > { %281 = sbr.rel (%p3026_p10) target bundleno = 709 (0x2c5), region = 44 }
  0x6f   : > { %2177 = dma.done.wait (%p3027_p0), [#allocation3], 384   ;;  %p3028_p11 = pmov %p3027_p0 }
  0x70   : > { %p3029_p13 = pmov %p3027_p0 }
  0x71   : > { %2179 = vsyncadd (%p3028_p11), [#allocation3], 4294966912 }
  0x72   : > { %2181 = dma.done.wait (%p3029_p13), [#allocation5], 3072   ;;  %p3030_p2 = pmov %p3027_p0 }
  0x73   : > { %s295_s8 = sand.u32 1, %s2306_s25   ;;  %s297_s24 = sand.u32 1, %s2194_s22  }
  0x74   : > { %2183 = vsyncadd (%p3030_p2), [#allocation5], 4294964224  ;;  %s2453_s14 = sshll.u32 %s297_s24, 3  ;;  %s296_s27 = scalar_lea.sflag [#allocation8], %s295_s8 }
  0x75   : > { %s299_s10 = scalar_lea.vmem [#allocation7], %s2453_s14  ;;  %p3031_p12 = scmp.ne.s32.totalorder %s3017_s26, 0 }
  0x77   : > { %2185 = dma.done.wait (%p3031_p12), %s296_s27, 256  }
  0x78   : > { %2187 = vsyncadd (%p3031_p12), %s296_s27, 4294967040  ;;  %s1610_s13 = sshll.u32 %s2306_s25, 3  ;;  %v346_v0 = vlaneseq  ;;  %v351_v4 = vld [vmem:[%s299_s10] sm:$0xff]  ;;  %s2211_s26 = smov 119   ;;  %v611_v15 = vld [vmem:[#allocation2 + $0x9] sm:$0x1] }
  0x79   : > { %v348_v1 = vstv %s1610_s13  ;;  %s2212_s11 = smov 105   ;;  %s2213_s12 = smov 86   ;;  %v479_v14 = vld [vmem:[#allocation2 + $0x1] sm:$0x1]  ;;  %v2216_v17 = vmov 0   ;;  %vm612_vm3 = vcmp.gt.f32.partialorder %v611_v15, 0.0 }
  0x7a   : > { %v347_v2 = vshrl.u32 %v346_v0, 7  ;;  %s2214_s17 = smov 89   ;;  %s2215_s30 = smov 121   ;;  %vm480_vm2 = vcmp.gt.f32.partialorder %v479_v14, 0.0  ;;  %v613_v20 = vsel %vm612_vm3, 1, %v2216_v17  ;;  %v2219_v26 = vmov 0.0  }
  0x7b   : > { %v481_v18 = vsel %vm480_vm2, 1, %v2216_v17  ;;  %s2217_s21 = smov 44   ;;  %s2218_s29 = smov 96   ;;  %v2498_v23 = vld [vmem:[%s3000_s0] sm:$0x1]  ;;  %1708 = vmatprep.subr.mxu0 %v2219_v26  ;;  %1735 = vmatprep.subr.mxu1 %v2219_v26  ;;  %vm388_vm5 = vcmask 769024  }
  0x7c   : > { %v2462_v3 = vadd.s32 %v348_v1, %v347_v2  ;;  %v2483_v16 = vsub.s32 0, %v347_v2  ;;  %s308_s18 = scalar_lea.vmem [#allocation9], %s2453_s14  ;;  %s2220_s20 = smov 98   ;;  %v764_v40 = vld [vmem:[#allocation4 + $0x58] sm:$0x3f]  ;;  %vm768_vm12 = vcmask 1045504  }
  0x7d   : > { %v355_v24 = vld [vmem:[%s308_s18] sm:$0xff]  ;;  %s2221_s28 = smov 68   ;;  %s2222_s9 = smov 118   ;;  %1709 = vmatpush3.msk.msra.mxu0 %vm768_vm12, %v764_v40  ;;  %v762_v53 = vld [vmem:[#allocation4 + $0x48] sm:$0xff]  ;;  %v761_v60 = vld [vmem:[#allocation4 + $0x40] sm:$0xff]  ;;  %vm2223_vm2 = vmmov 0  }
  0x7e   : > { %vm350_vm0 = vcmp.lt.s32.totalorder %v2462_v3, 16  ;;  %v485_v19 = vrot.slane %v481_v18, %v2483_v16  ;;  %v617_v22 = vrot.slane %v613_v20, %v2483_v16  ;;  %v452_v25 = vrot.slane %v2498_v23, %v2483_v16  ;;  %v854_v43 = vld [vmem:[#allocation6 + $0x58] sm:$0x3f]  ;;  %v763_v44 = vld [vmem:[#allocation4 + $0x50] sm:$0xff]  ;;  %1710 = vmatprep.subr.mxu0 %v2219_v26  ;;  %1732 = vmatprep.mubr.msk.f32.mxu0 %vm2223_vm2, %v2219_v26  ;;  %s2224_s8 = smov 49   ;;  %s2225_s24 = smov 71  }
  0x7f   : > { %v2467_v5 = vsel %vm350_vm0, %v351_v4, -10000.0  ;;  %v2515_v29 = vsel %vm350_vm0, %v355_v24, 0.0  ;;  %v859_v50 = vsel %vm768_vm12, %v854_v43, 0  ;;  %1711 = vmatpush3.msra.mxu0 %v763_v44  ;;  %v760_v63 = vld [vmem:[#allocation4 + $0x38] sm:$0xff]  ;;  %v759_v4 = vld [vmem:[#allocation4 + $0x30] sm:$0xff]  ;;  %v851_v24 = vld [vmem:[#allocation6 + $0x40] sm:$0xff]  ;;  %1759 = vmatprep.mubr.msk.f32.mxu1 %vm2223_vm2, %v2219_v26 }
  0x80   : > { %v358_v6 = vand.u32 2147483647, %v2467_v5  ;;  %vm362_vm1 = vcmp.ge.f32.partialorder %v2467_v5, 0.0  ;;  %vm2490_vm4 = vcmp.eq.s32.totalorder %v485_v19, 1  ;;  %vm2509_vm6 = vcmp.eq.s32.totalorder %v617_v22, 1  ;;  %1712 = vmatprep.subr.mxu0 %v2219_v26  ;;  %v755_v18 = vld [vmem:[#allocation4 + $0x10] sm:$0xff] }
  0x81   : > { %v2519_v31 = vmul.f32 %v452_v25, %v2515_v29  ;;  %v381_v36 = vsub.f32 1.0, %v2515_v29  ;;  %vm397_vm7 = vcmp.eq.f32.partialorder %v2515_v29, 1.0  ;;  %vm400_vm8 = vcmp.eq.f32.partialorder %v2515_v29, 0.0  ;;  %1713 = vmatpush3.msra.mxu0 %v762_v53  ;;  %v852_v19 = vld [vmem:[#allocation6 + $0x48] sm:$0xff]  ;;  %s2226_s14 = smov 77   ;;  %s2227_s27 = smov 81  }
  0x82   : > { %v359_v7 = vsub.f32 0.0, %v358_v6  ;;  %v367_v46 = vmax.f32 %v2467_v5, 0.0  ;;  %v2553_v52 = vand.u32 4294901760, %v859_v50  ;;  %v378_v54 = vmul.f32 %v2515_v29, %v2467_v5  ;;  %1714 = vmatprep.subr.mxu0 %v2219_v26  ;;  %v630_v6 = vld [vmem:[#allocation2 + $0xa] sm:$0x1]  ;;  %v754_v22 = vld [vmem:[#allocation4 + $0x8] sm:$0xff] }
  0x83   : > { %1715 = vmatpush3.msra.mxu0 %v761_v60  ;;  %v2593_v21 = vand.u32 4294901760, %v852_v19  ;;  %v848_v44 = vld [vmem:[#allocation6 + $0x28] sm:$0xff]  ;;  %s2228_s10 = smov 92   ;;  %s2229_s13 = smov 64  }
  0x84   : > { %v360_v8 = vmul.f32 1.442695, %v359_v7  ;;  %1736 = vmatpush3.msra.mxu1 %v2553_v52  ;;  %1716 = vmatprep.subr.mxu0 %v2219_v26  ;;  %v758_v7 = vld [vmem:[#allocation4 + $0x28] sm:$0xff]  ;;  %v2639_v49 = vand.u32 4294901760, %v848_v44  ;;  %s2236_s16 = smov 127   ;;  %s2237_s19 = smov 101  }
  0x85   : > { %1737 = vmatprep.subr.mxu1 %v2219_v26  ;;  %1717 = vmatpush3.msra.mxu0 %v760_v63  ;;  %s2238_s18 = smov 52   ;;  %p341_p8 = scmp.lt.s32.totalorder %s2306_s25, 1 }
  0x86   : > { %2016 = vpow2.f32 %v360_v8  ;;  %1718 = vmatprep.subr.mxu0 %v2219_v26  ;;  %v2580_v8 = vsub.f32 %v859_v50, %v2553_v52  ;;  %v2657_v60 = vsub.f32 %v848_v44, %v2639_v49  ;;  %v843_v44 = vld [vmem:[#allocation6] sm:$0xff] }
  0x87   : > { %1719 = vmatpush3.msra.mxu0 %v759_v4  ;;  %s3053_s25 = smov (!%p341_p8, %s2306_s25), 1 }
  0x88   : > { %1720 = vmatprep.subr.mxu0 %v2219_v26 }
  0x89   : > { %1721 = vmatpush3.msra.mxu0 %v758_v7 }
  0x8a   : > { %1722 = vmatprep.subr.mxu0 %v2219_v26 }
  0x93   : > { %v2470_v9 = vpop.eup %2016 }
  0x94   : > { %v364_v10 = vadd.f32 1.0, %v2470_v9  ;;  %v363_v11 = vsel %vm362_vm1, 1.0, %v2470_v9  ;;  %v371_v30 = vmul.f32 -0.5, %v2470_v9  ;;  %v374_v35 = vand.u32 2147483647, %v2470_v9 }
  0x95   : > { %vm631_vm1 = vcmp.gt.f32.partialorder %v630_v6, 0.0 }
  0x96   : > { %2018 = vrcp.f32 %v364_v10  ;;  %v372_v34 = vadd.f32 1.0, %v371_v30  ;;  %vm2543_vm13 = vcmp.lt.f32.partialorder %v374_v35, 0.0004427343  ;;  %v632_v15 = vsel %vm631_vm1, 1, %v2216_v17 }
  0x97   : > { %2020 = vlog2.f32 %v364_v10  ;;  %v756_v10 = vld [vmem:[#allocation4 + $0x18] sm:$0xff]  ;;  %v636_v25 = vrot.slane %v632_v15, %v2483_v16  ;;  %v2603_v30 = vsub.f32 %v852_v19, %v2593_v21  ;;  %v2610_v35 = vand.u32 4294901760, %v851_v24 }
  0x98   : > { %v373_v41 = vmul.f32 %v2470_v9, %v372_v34  ;;  %v757_v9 = vld [vmem:[#allocation4 + $0x20] sm:$0xff] }
  0x99   : > { %1723 = vmatpush3.msra.mxu0 %v757_v9  ;;  %vm2621_vm3 = vcmp.eq.s32.totalorder %v636_v25, 1  ;;  %v1001_v9 = vand.u32 4294901760, %v2657_v60 }
  0x9a   : > { %1724 = vmatprep.subr.mxu0 %v2219_v26 }
  0x9b   : > { %1725 = vmatpush3.msra.mxu0 %v756_v10 }
  0x9c   : > { %1726 = vmatprep.subr.mxu0 %v2219_v26 }
  0x9d   : > { %1727 = vmatpush3.msra.mxu0 %v755_v18 }
  0x9e   : > { %1728 = vmatprep.subr.mxu0 %v2219_v26 }
  0x9f   : > { %1729 = vmatpush3.msra.mxu0 %v754_v22 }
  0xa0   : > { %1730 = vmatprep.subr.mxu0 %v2219_v26 }
  0xa3   : > { %v2019_v12 = vpop.eup %2018 }
  0xa4   : > { %v2475_v13 = vmul.f32 %v2019_v12, %v363_v11  ;;  %v2021_v45 = vpop.eup %2020  ;;  %v853_v11 = vld [vmem:[#allocation6 + $0x50] sm:$0xff]  ;;  %v959_v12 = vand.u32 4294901760, %v2580_v8 }
  0xa5   : > { %v370_v51 = vmul.f32 0.6931472, %v2021_v45  ;;  %v2585_v14 = vand.u32 4294901760, %v853_v11  ;;  %v847_v45 = vld [vmem:[#allocation6 + $0x20] sm:$0xff] }
  0xa6   : > { %517 = vrot.lane.b32.xlu1 %v2475_v13, %s2211_s26  ;;  %499 = vrot.lane.b32.xlu0 %v2475_v13, %s2212_s11  ;;  %v487_v27 = vsel %vm2490_vm4, %v2475_v13, -1.0  ;;  %v619_v33 = vsel %vm2509_vm6, %v2475_v13, -1.0  ;;  %v380_v38 = vmul.f32 %v2475_v13, %v2515_v29  ;;  %v382_v39 = vsub.f32 1.0, %v2475_v13  ;;  %s2230_s11 = smov 90  }
  0xa7   : > { %v488_v32 = vsel %vm388_vm5, %v487_v27, -inf  ;;  %v620_v37 = vsel %vm388_vm5, %v619_v33, -inf  ;;  %vm396_vm9 = vcmp.lt.f32.partialorder %v2475_v13, 0.7  ;;  %vm399_vm11 = vcmp.gt.f32.partialorder %v2475_v13, 0.3  ;;  %1738 = vmatpush3.msra.mxu1 %v2585_v14 }
  0xa8   : > { %vm2537_vm10 = vmand %vm396_vm9, %vm397_vm7  ;;  %v383_v48 = vmul.f32 %v382_v39, %v381_v36  ;;  %v376_v56 = vsel %vm2543_vm13, %v373_v41, %v370_v51  ;;  %v2591_v20 = vsub.f32 %v853_v11, %v2585_v14  ;;  %1739 = vmatprep.subr.mxu1 %v2219_v26  ;;  %v753_v27 = vld [vmem:[#allocation4] sm:$0xff]  ;;  %v960_v28 = vsub.f32 %v2580_v8, %v959_v12  ;;  %v850_v33 = vld [vmem:[#allocation6 + $0x38] sm:$0xff] }
  0xa9   : > { %vm2549_vm14 = vmand %vm399_vm11, %vm400_vm8  ;;  %v377_v57 = vadd.f32 %v376_v56, %v367_v46  ;;  %1740 = vmatpush3.msra.mxu1 %v2593_v21  ;;  %1731 = vmatpush3.msra.mxu0 %v753_v27  ;;  %v973_v36 = vand.u32 4294901760, %v2603_v30  ;;  %v849_v39 = vld [vmem:[#allocation6 + $0x30] sm:$0xff]  ;;  %v2627_v41 = vsub.f32 %v851_v24, %v2610_v35  ;;  %v846_v46 = vld [vmem:[#allocation6 + $0x18] sm:$0xff]  ;;  %v2641_v50 = vand.u32 4294901760, %v847_v45 }
  0xaa   : > { %503 = vrot.lane.b32.xlu1 %v2475_v13, %s2213_s12  ;;  %v384_v55 = vadd.f32 %v383_v48, %v380_v38  ;;  %vm402_vm15 = vmor %vm2537_vm10, %vm2549_vm14  ;;  %v961_v34 = vand.u32 4294901760, %v960_v28  ;;  %1762 = vmatprep.subr.mxu0 %v2219_v26  ;;  %v2619_v38 = vand.u32 4294901760, %v850_v33  ;;  %v2632_v43 = vand.u32 4294901760, %v849_v39  ;;  %v845_v51 = vld [vmem:[#allocation6 + $0x10] sm:$0xff]  ;;  %s2231_s12 = smov 10  }
  0xab   : > { %v2568_v59 = vsel %vm402_vm15, 1.0, %v2219_v26  ;;  %v379_v61 = vsub.f32 %v377_v57, %v378_v54  ;;  %1733 = vmatmul.mubr.msk.f32.vlgmr.msra.gmra.mxu0 %vm388_vm5, %v2515_v29  ;;  %1741 = vmatprep.subr.mxu1 %v2219_v26  ;;  %v974_v42 = vsub.f32 %v2603_v30, %v973_v36  ;;  %v980_v54 = vand.u32 4294901760, %v2627_v41 }
  0xac   : > { %v385_v58 = vsub.f32 1.0, %v384_v55  ;;  %1763 = vmatpush3.msra.mxu0 %v961_v34  ;;  %1742 = vmatpush3.msra.mxu1 %v2610_v35  ;;  %v2637_v48 = vsub.f32 %v850_v33, %v2619_v38  ;;  %v2647_v55 = vsub.f32 %v849_v39, %v2632_v43  ;;  %v2649_v56 = vand.u32 4294901760, %v846_v46  ;;  %v844_v34 = vld [vmem:[#allocation6 + $0x8] sm:$0xff] }
  0xad   : > { %v2575_v2 = vmul.f32 %v2568_v59, %v379_v61  ;;  %1764 = vmatprep.subr.mxu0 %v2219_v26  ;;  %v975_v53 = vand.u32 4294901760, %v974_v42  ;;  %1743 = vmatprep.subr.mxu1 %v2219_v26  ;;  %v638_v57 = vsel %vm2621_vm3, %v2475_v13, -1.0  ;;  %v2671_v6 = vand.u32 4294901760, %v845_v51 }
  0xae   : > { %521 = vrot.lane.b32.xlu1 %v2475_v13, %s2214_s17  ;;  %v386_v62 = vmul.f32 %v385_v58, %v385_v58  ;;  %1744 = vmatpush3.msra.mxu1 %v2619_v38  ;;  %v987_v58 = vand.u32 4294901760, %v2637_v48  ;;  %v994_v63 = vand.u32 4294901760, %v2647_v55  ;;  %v2669_v4 = vsub.f32 %v846_v46, %v2649_v56  ;;  %s2232_s17 = smov 4  }
  0xaf   : > { %1745 = vmatprep.subr.mxu1 %v2219_v26  ;;  %v639_v11 = vsel %vm388_vm5, %v638_v57, -inf  ;;  %v1002_v24 = vsub.f32 %v2657_v60, %v1001_v9  ;;  %v2697_v28 = vsub.f32 %v845_v51, %v2671_v6  ;;  %v2706_v40 = vand.u32 4294901760, %v844_v34  ;;  %1786 = vmatprep.mubr.msk.f32.mxu0 %vm2223_vm2, %v2219_v26 }
  0xb0   : > { %v2572_v1 = vmul.f32 %v386_v62, %v379_v61  ;;  %v2660_v61 = vsub.f32 %v847_v45, %v2641_v50  ;;  %v981_v62 = vsub.f32 %v2627_v41, %v980_v54  ;;  %1746 = vmatpush3.msra.mxu1 %v2632_v43  ;;  %v988_v7 = vsub.f32 %v2637_v48, %v987_v58 }
  0xb1   : > { %v995_v18 = vsub.f32 %v2647_v55, %v994_v63  ;;  %v1015_v19 = vand.u32 4294901760, %v2669_v4  ;;  %1747 = vmatprep.subr.mxu1 %v2219_v26  ;;  %v1003_v39 = vand.u32 4294901760, %v1002_v24  ;;  %v2713_v46 = vsub.f32 %v844_v34, %v2706_v40 }
  0xb2   : > { %507 = vrot.lane.b32.xlu1 %v2475_v13, %s2215_s30  ;;  %v1008_v10 = vand.u32 4294901760, %v2660_v61  ;;  %v982_v15 = vand.u32 4294901760, %v981_v62  ;;  %v989_v22 = vand.u32 4294901760, %v988_v7  ;;  %1748 = vmatpush3.msra.mxu1 %v2639_v49  ;;  %v2716_v51 = vand.u32 4294901760, %v843_v44  ;;  %s2233_s30 = smov 124  }
  0xb3   : > { %v996_v27 = vand.u32 4294901760, %v995_v18  ;;  %v1016_v33 = vsub.f32 %v2669_v4, %v1015_v19  ;;  %1749 = vmatprep.subr.mxu1 %v2219_v26  ;;  %v659_v18 = vld [vmem:[#allocation2 + $0xc] sm:$0x1]  ;;  %vm427_vm9 = vcmp.gt.f32.partialorder %v2498_v23, 0.0  ;;  %vm736_vm14 = vcmask 540168  }
  0xb4   : > { %v1009_v25 = vsub.f32 %v2660_v61, %v1008_v10  ;;  %1750 = vmatpush3.msra.mxu1 %v2641_v50  ;;  %v2727_v7 = vsub.f32 %v843_v44, %v2716_v51  ;;  %vm660_vm4 = vcmp.gt.f32.partialorder %v659_v18, 0.0 }
  0xb5   : > { %1751 = vmatprep.subr.mxu1 %v2219_v26  ;;  %v1017_v57 = vand.u32 4294901760, %v1016_v33  ;;  %v661_v44 = vsel %vm660_vm4, 1, %v2216_v17 }
  0xb6   : > { %525 = vrot.lane.b32.xlu1 %v2475_v13, %s2217_s21  ;;  %v1010_v42 = vand.u32 4294901760, %v1009_v25  ;;  %1752 = vmatpush3.msra.mxu1 %v2649_v56  ;;  %s2234_s21 = smov 78  }
  0xb7   : > { %1753 = vmatprep.subr.mxu1 %v2219_v26 }
  0xb8   : > { %1754 = vmatpush3.msra.mxu1 %v2671_v6 }
  0xb9   : > { %1755 = vmatprep.subr.mxu1 %v2219_v26 }
  0xba   : > { %529 = vrot.lane.b32.xlu1 %v2475_v13, %s2218_s29  ;;  %1756 = vmatpush3.msra.mxu1 %v2706_v40  ;;  %s2235_s29 = smov 66  }
  0xbb   : > { %1757 = vmatprep.subr.mxu1 %v2219_v26 }
  0xbc   : > { %1758 = vmatpush3.msra.mxu1 %v2716_v51 }
  0xbd   : > { %1789 = vmatprep.subr.mxu1 %v2219_v26 }
  0xbe   : > { %556 = vrot.lane.b32.xlu1 %v2475_v13, %s2220_s20  ;;  %s2239_s20 = smov 63  }
  0xc2   : > { %560 = vrot.lane.b32.xlu1 %v2475_v13, %s2221_s28  ;;  %s2240_s28 = smov 65  }
  0xc5   : > { %489 = vmax.xlane.f32.xlu0 %v488_v32  ;;  %v966_v32 = vand.u32 4294901760, %v2591_v20 }
  0xc6   : > { %575 = vrot.lane.b32.xlu1 %v2475_v13, %s2222_s9  ;;  %s2241_s9 = smov 43  }
  0xc9   : > { %621 = vmax.xlane.f32.xlu0 %v620_v37  ;;  %v967_v37 = vsub.f32 %v2591_v20, %v966_v32 }
  0xcb   : > { %v968_v47 = vand.u32 4294901760, %v967_v37  ;;  %v842_v37 = vmul.f32 %v2475_v13, %v2475_v13 }
  0xcd   : > { %1765 = vmatpush3.msra.mxu0 %v968_v47  ;;  %v856_v45 = vsel %vm388_vm5, %v842_v37, 0  ;;  %v1022_v47 = vand.u32 4294901760, %v2697_v28 }
  0xce   : > { %1766 = vmatprep.subr.mxu0 %v2219_v26 }
  0xcf   : > { %1767 = vmatpush3.msra.mxu0 %v975_v53  ;;  %v2718_v53 = vand.u32 4294901760, %v856_v45  ;;  %v1023_v62 = vsub.f32 %v2697_v28, %v1022_v47 }
  0xd0   : > { %1768 = vmatprep.subr.mxu0 %v2219_v26 }
  0xd1   : > { %1769 = vmatpush3.msra.mxu0 %v982_v15  ;;  %v2731_v15 = vsub.f32 %v856_v45, %v2718_v53  ;;  %v665_v45 = vrot.slane %v661_v44, %v2483_v16 }
  0xd2   : > { %1770 = vmatprep.subr.mxu0 %v2219_v26 }
  0xd3   : > { %1771 = vmatpush3.msra.mxu0 %v989_v22  ;;  %v1024_v22 = vand.u32 4294901760, %v1023_v62  ;;  %v940_v25 = vand.u32 4294901760, %v2731_v15  ;;  %vm2767_vm6 = vcmp.eq.s32.totalorder %v665_v45, 1 }
  0xd4   : > { %1772 = vmatprep.subr.mxu0 %v2219_v26  ;;  %v667_v62 = vsel %vm2767_vm6, %v2475_v13, -1.0 }
  0xd5   : > { %1773 = vmatpush3.msra.mxu0 %v996_v27  ;;  %v1036_v27 = vand.u32 4294901760, %v2727_v7  ;;  %v941_v34 = vsub.f32 %v2731_v15, %v940_v25  ;;  %v668_v18 = vsel %vm388_vm5, %v667_v62, -inf }
  0xd6   : > { %1774 = vmatprep.subr.mxu0 %v2219_v26 }
  0xd7   : > { %1775 = vmatpush3.msra.mxu0 %v1003_v39  ;;  %v1037_v37 = vsub.f32 %v2727_v7, %v1036_v27  ;;  %v942_v39 = vand.u32 4294901760, %v941_v34 }
  0xd8   : > { %1776 = vmatprep.subr.mxu0 %v2219_v26 }
  0xd9   : > { %1777 = vmatpush3.msra.mxu0 %v1010_v42  ;;  %v1038_v42 = vand.u32 4294901760, %v1037_v37  ;;  %1760 = vmatmul.mubr.f32.vlgmr.msra.gmra.mxu1 %v942_v39 }
  0xda   : > { %1778 = vmatprep.subr.mxu0 %v2219_v26  ;;  %1790 = vmatpush3.msra.mxu1 %v2580_v8 }
  0xdb   : > { %1779 = vmatpush3.msra.mxu0 %v1017_v57  ;;  %1791 = vmatprep.subr.mxu1 %v2219_v26 }
  0xdc   : > { %1780 = vmatprep.subr.mxu0 %v2219_v26  ;;  %1792 = vmatpush3.msra.mxu1 %v2591_v20  ;;  %v428_v20 = vsel %vm427_vm9, 1, %v2216_v17 }
  0xdd   : > { %1781 = vmatpush3.msra.mxu0 %v1024_v22  ;;  %1793 = vmatprep.subr.mxu1 %v2219_v26  ;;  %v678_v22 = vld [vmem:[#allocation2 + $0xd] sm:$0x1] }
  0xde   : > { %1782 = vmatprep.subr.mxu0 %v2219_v26  ;;  %1794 = vmatpush3.msra.mxu1 %v2603_v30  ;;  %vm679_vm7 = vcmp.gt.f32.partialorder %v678_v22, 0.0  ;;  %v432_v30 = vrot.slane %v428_v20, %v2483_v16 }
  0xdf   : > { %546 = vrot.lane.b32.xlu0 %v2475_v13, %s2224_s8  ;;  %1795 = vmatprep.subr.mxu1 %v2219_v26  ;;  %s2242_s8 = smov 116  }
  0xe0   : > { %1796 = vmatpush3.msra.mxu1 %v2627_v41  ;;  %1813 = vmatprep.mubr.msk.f32.mxu1 %vm2223_vm2, %v2219_v26  ;;  %vm433_vm10 = vcmp.eq.s32.totalorder %v432_v30, 1 }
  0xe1   : > { %1797 = vmatprep.subr.mxu1 %v2219_v26 }
  0xe2   : > { %1798 = vmatpush3.msra.mxu1 %v2637_v48 }
  0xe3   : > { %565 = vrot.lane.b32.xlu0 %v2475_v13, %s2225_s24  ;;  %1799 = vmatprep.subr.mxu1 %v2219_v26  ;;  %s2243_s24 = smov 47  }
  0xe4   : > { %1800 = vmatpush3.msra.mxu1 %v2647_v55 }
  0xe5   : > { %1801 = vmatprep.subr.mxu1 %v2219_v26 }
  0xe6   : > { %1802 = vmatpush3.msra.mxu1 %v2657_v60 }
  0xe7   : > { %583 = vrot.lane.b32.xlu0 %v2475_v13, %s2226_s14  ;;  %1803 = vmatprep.subr.mxu1 %v2219_v26  ;;  %s2244_s14 = smov 115  }
  0xe8   : > { %1804 = vmatpush3.msra.mxu1 %v2660_v61 }
  0xe9   : > { %1805 = vmatprep.subr.mxu1 %v2219_v26 }
  0xea   : > { %640 = vmax.xlane.f32.xlu1 %v639_v11  ;;  %v1029_v11 = vand.u32 4294901760, %v2713_v46  ;;  %1806 = vmatpush3.msra.mxu1 %v2669_v4 }
  0xeb   : > { %1807 = vmatprep.subr.mxu1 %v2219_v26 }
  0xec   : > { %v1030_v24 = vsub.f32 %v2713_v46, %v1029_v11  ;;  %1808 = vmatpush3.msra.mxu1 %v2697_v28 }
  0xed   : > { %1809 = vmatprep.subr.mxu1 %v2219_v26 }
  0xee   : > { %v1031_v33 = vand.u32 4294901760, %v1030_v24  ;;  %1810 = vmatpush3.msra.mxu1 %v2713_v46  ;;  %v680_v24 = vsel %vm679_vm7, 1, %v2216_v17 }
  0xef   : > { %1811 = vmatprep.subr.mxu1 %v2219_v26  ;;  %v684_v8 = vrot.slane %v680_v24, %v2483_v16 }
  0xf0   : > { %1783 = vmatpush3.msra.mxu0 %v1031_v33  ;;  %1812 = vmatpush3.msra.mxu1 %v2727_v7 }
  0xf1   : > { %1784 = vmatprep.subr.mxu0 %v2219_v26  ;;  %1843 = vmatprep.subr.mxu1 %v2219_v26  ;;  %vm2851_vm8 = vcmp.eq.s32.totalorder %v684_v8, 1 }
  0xf2   : > { %1785 = vmatpush3.msra.mxu0 %v1038_v42  ;;  %1814 = vmatmul.mubr.f32.vlgmr.msra.gmra.mxu1 %v2731_v15 }
  0xf3   : > { %1816 = vmatprep.subr.mxu0 %v2219_v26  ;;  %1787 = vmatmul.mubr.f32.vlgmr.msra.gmra.mxu0 %v2718_v53 }
  0xf4   : > { %1817 = vmatpush3.msra.mxu0 %v2553_v52  ;;  %1844 = vmatpush3.msra.mxu1 %v959_v12  ;;  %v686_v12 = vsel %vm2851_vm8, %v2475_v13, -1.0 }
  0xf5   : > { %1818 = vmatprep.subr.mxu0 %v2219_v26  ;;  %1840 = vmatprep.mubr.msk.f32.mxu0 %vm2223_vm2, %v2219_v26 }
  0xf6   : > { %1819 = vmatpush3.msra.mxu0 %v2585_v14  ;;  %1845 = vmatprep.subr.mxu1 %v2219_v26 }
  0xf7   : > { %1820 = vmatprep.subr.mxu0 %v2219_v26  ;;  %1846 = vmatpush3.msra.mxu1 %v966_v32 }
  0xf8   : > { %1821 = vmatpush3.msra.mxu0 %v2593_v21  ;;  %1847 = vmatprep.subr.mxu1 %v2219_v26 }
  0xf9   : > { %1822 = vmatprep.subr.mxu0 %v2219_v26  ;;  %1848 = vmatpush3.msra.mxu1 %v973_v36 }
  0xfa   : > { %1823 = vmatpush3.msra.mxu0 %v2610_v35  ;;  %1849 = vmatprep.subr.mxu1 %v2219_v26 }
  0xfb   : > { %579 = vrot.lane.b32.xlu1 %v2475_v13, %s2227_s27  ;;  %1824 = vmatprep.subr.mxu0 %v2219_v26  ;;  %s2245_s27 = smov 62  }
  0xfc   : > { %1825 = vmatpush3.msra.mxu0 %v2619_v38  ;;  %1850 = vmatpush3.msra.mxu1 %v980_v54 }
  0xfd   : > { %1826 = vmatprep.subr.mxu0 %v2219_v26  ;;  %1851 = vmatprep.subr.mxu1 %v2219_v26 }
  0xfe   : > { %1827 = vmatpush3.msra.mxu0 %v2632_v43  ;;  %1852 = vmatpush3.msra.mxu1 %v987_v58 }
  0xff   : > { %587 = vrot.lane.b32.xlu1 %v2475_v13, %s2228_s10  ;;  %1828 = vmatprep.subr.mxu0 %v2219_v26  ;;  %s2246_s10 = smov 33  }
 0x100   : > { %1829 = vmatpush3.msra.mxu0 %v2639_v49  ;;  %1853 = vmatprep.subr.mxu1 %v2219_v26 }
 0x101   : > { %1830 = vmatprep.subr.mxu0 %v2219_v26  ;;  %1854 = vmatpush3.msra.mxu1 %v994_v63 }
 0x102   : > { %1831 = vmatpush3.msra.mxu0 %v2641_v50  ;;  %1855 = vmatprep.subr.mxu1 %v2219_v26 }
 0x103   : > { %597 = vrot.lane.b32.xlu1 %v2475_v13, %s2229_s13  ;;  %1832 = vmatprep.subr.mxu0 %v2219_v26 }
 0x104   : > { %1833 = vmatpush3.msra.mxu0 %v2649_v56  ;;  %1856 = vmatpush3.msra.mxu1 %v1001_v9 }
 0x105   : > { %1834 = vmatprep.subr.mxu0 %v2219_v26  ;;  %1857 = vmatprep.subr.mxu1 %v2219_v26 }
 0x106   : > { %669 = vmax.xlane.f32.xlu0 %v668_v18  ;;  %1835 = vmatpush3.msra.mxu0 %v2671_v6 }
 0x107   : > { %1836 = vmatprep.subr.mxu0 %v2219_v26  ;;  %1858 = vmatpush3.msra.mxu1 %v1008_v10 }
 0x108   : > { %1837 = vmatpush3.msra.mxu0 %v2706_v40  ;;  %1859 = vmatprep.subr.mxu1 %v2219_v26 }
 0x109   : > { %1838 = vmatprep.subr.mxu0 %v2219_v26  ;;  %1860 = vmatpush3.msra.mxu1 %v1015_v19 }
 0x10a   : > { %1839 = vmatpush3.msra.mxu0 %v2716_v51  ;;  %1861 = vmatprep.subr.mxu1 %v2219_v26 }
 0x10b   : > { %1870 = vmatprep.subr.mxu0 %v2219_v26  ;;  %1841 = vmatmul.mubr.f32.vlgmr.msra.gmra.mxu0 %v940_v25 }
 0x10c   : > { %1871 = vmatpush3.msra.mxu0 %v2553_v52  ;;  %1862 = vmatpush3.msra.mxu1 %v1022_v47 }
 0x10d   : > { %1872 = vmatprep.subr.mxu0 %v2219_v26  ;;  %1863 = vmatprep.subr.mxu1 %v2219_v26 }
 0x10e   : > { %1873 = vmatpush3.msra.mxu0 %v2585_v14  ;;  %v687_v14 = vsel %vm388_vm5, %v686_v12, -inf  ;;  %1864 = vmatpush3.msra.mxu1 %v1029_v11 }
 0x10f   : > { %1874 = vmatprep.subr.mxu0 %v2219_v26  ;;  %1865 = vmatprep.subr.mxu1 %v2219_v26 }
 0x110   : > { %1875 = vmatpush3.msra.mxu0 %v2593_v21  ;;  %1866 = vmatpush3.msra.mxu1 %v1036_v27 }
 0x111   : > { %1876 = vmatprep.subr.mxu0 %v2219_v26  ;;  %1867 = vmatprep.mubr.msk.f32.mxu1 %vm2223_vm2, %v2219_v26 }
 0x112   : > { %1877 = vmatpush3.msra.mxu0 %v2610_v35  ;;  %1868 = vmatmul.mubr.f32.vlgmr.msra.gmra.mxu1 %v2718_v53  ;;  %v2912_v35 = vsel %vm433_vm10, %v2467_v5, -1e+30 }
 0x113   : > { %1878 = vmatprep.subr.mxu0 %v2219_v26  ;;  %1894 = vmatprep.mubr.msk.f32.mxu0 %vm2223_vm2, %v2219_v26  ;;  %v435_v36 = vsel %vm388_vm5, %v2912_v35, -inf }
 0x114   : > { %1879 = vmatpush3.msra.mxu0 %v2619_v38  ;;  %v464_v38 = vld [vmem:[#allocation2] sm:$0x1] }
 0x115   : > { %1880 = vmatprep.subr.mxu0 %v2219_v26  ;;  %vm465_vm11 = vcmp.gt.f32.partialorder %v464_v38, 0.0 }
 0x116   : > { %1881 = vmatpush3.msra.mxu0 %v2632_v43 }
 0x117   : > { %1882 = vmatprep.subr.mxu0 %v2219_v26 }
 0x118   : > { %1883 = vmatpush3.msra.mxu0 %v2639_v49  ;;  %v518_v21 = vpop.permute.xlu1 %517  ;;  %v500_v41 = vpop.permute.xlu0 %499  ;;  %v466_v49 = vsel %vm465_vm11, 1, %v2216_v17 }
 0x119   : > { %1884 = vmatprep.subr.mxu0 %v2219_v26  ;;  %v470_v54 = vrot.slane %v466_v49, %v2483_v16  ;;  %v520_v55 = vmax.f32 %v2475_v13, %v518_v21  ;;  %v502_v46 = vmax.f32 %v2475_v13, %v500_v41 }
 0x11a   : > { %1885 = vmatpush3.msra.mxu0 %v2641_v50 }
 0x11b   : > { %1886 = vmatprep.subr.mxu0 %v2219_v26  ;;  %vm471_vm12 = vcmp.eq.s32.totalorder %v470_v54, 1 }
 0x11c   : > { %601 = vrot.lane.b32.xlu0 %v2475_v13, %s2230_s11  ;;  %1887 = vmatpush3.msra.mxu0 %v2649_v56  ;;  %v504_v32 = vpop.permute.xlu1 %503  ;;  %s2249_s11 = smov 120  }
 0x11d   : > { %1888 = vmatprep.subr.mxu0 %v2219_v26  ;;  %v506_v47 = vmax.f32 %v502_v46, %v504_v32 }
 0x11e   : > { %1889 = vmatpush3.msra.mxu0 %v2671_v6  ;;  %v472_v6 = vsel %vm471_vm12, %v2475_v13, -1.0 }
 0x11f   : > { %1890 = vmatprep.subr.mxu0 %v2219_v26  ;;  %v473_v16 = vsel %vm388_vm5, %v472_v6, -inf  ;;  %v406_v6 = vsel %vm388_vm5, %v2575_v2, 0.0 }
 0x120   : > { %697 = vrot.lane.b32.xlu0 %v2475_v13, %s2231_s12  ;;  %1891 = vmatpush3.msra.mxu0 %v2706_v40  ;;  %v2916_v23 = vpop.permute.xlu1 %521  ;;  %s2251_s12 = smov 41  }
 0x121   : > { %1892 = vmatprep.subr.mxu0 %v2219_v26  ;;  %v524_v60 = vmax.f32 %v520_v55, %v2916_v23 }
 0x122   : > { %1893 = vmatpush3.msra.mxu0 %v2716_v51 }
 0x123   : > { %1895 = vmatmul.mubr.f32.vlgmr.msra.gmra.mxu0 %v2718_v53 }
 0x124   : > { %707 = vrot.lane.b32.xlu0 %v2475_v13, %s2232_s17  ;;  %v508_v43 = vpop.permute.xlu1 %507  ;;  %s1609_s17 = sshll.u32 %s3053_s25, 3 }
 0x125   : > { %v510_v53 = vsub.f32 %v506_v47, %v508_v43 }
 0x127   : > { %688 = vmax.xlane.f32.xlu1 %v687_v14  ;;  %v511_v11 = vmax.f32 %v510_v53, 0.0 }
 0x128   : > { %721 = vrot.lane.b32.xlu0 %v2475_v13, %s2233_s30  ;;  %v526_v50 = vpop.permute.xlu1 %525 }
 0x129   : > { %v528_v63 = vmax.f32 %v524_v60, %v526_v50 }
 0x12c   : > { %v530_v61 = vpop.permute.xlu1 %529 }
 0x12d   : > { %v532_v9 = vsub.f32 %v528_v63, %v530_v61  ;;  %v539_v15 = vsub.f32 %v2475_v13, %v530_v61  ;;  %v420_v63 = vsel %vm388_vm5, %v2515_v29, 0.0 }
 0x12f   : > { %v533_v19 = vmax.f32 %v532_v9, 0.0  ;;  %v540_v37 = vmax.f32 %v539_v15, 0.0  ;;  %v413_v9 = vsel %vm388_vm5, %v2568_v59, 0.0 }
 0x130   : > { %v557_v40 = vpop.permute.xlu1 %556 }
 0x131   : > { %v559_v7 = vmax.f32 %v2475_v13, %v557_v40  ;;  %v414_v40 = vrot.slane %v413_v9, 4 }
 0x134   : > { %v561_v51 = vpop.permute.xlu1 %560 }
 0x135   : > { %v563_v25 = vmax.f32 %v559_v7, %v561_v51  ;;  %v415_v7 = vadd.f32 %v414_v40, %v413_v9 }
 0x138   : > { %649 = vrot.lane.b32.xlu1 %v2475_v13, %s2234_s21  ;;  %v576_v27 = vpop.permute.xlu1 %575 }
 0x139   : > { %v578_v44 = vmax.f32 %v2475_v13, %v576_v27 }
 0x13c   : > { %726 = vrot.lane.b32.xlu1 %v2475_v13, %s2235_s29  ;;  %s2959_s29 = scalar_lea.vmem %s3006_s6, %s1609_s17 }
 0x13d   : > { %1467 = vst [vmem:[%s2959_s29] sm:$0xff] %v2219_v26 }
 0x147   : > { %436 = vmax.xlane.f32.xlu0 %v435_v36 }
 0x14e   : > { %v490_v48 = vpop.xlane.xlu0 %489 }
 0x14f   : > { %v491_v56 = vsub.f32 %v490_v48, %v2475_v13 }
 0x151   : > { %v492_v4 = vmax.f32 %v491_v56, 0.0 }
 0x152   : > { %v622_v58 = vpop.xlane.xlu0 %621 }
 0x153   : > { %v623_v52 = vsub.f32 %v622_v58, %v2475_v13 }
 0x155   : > { %v624_v14 = vmax.f32 %v623_v52, 0.0  ;;  %v1614_v52 = vsel %vm350_vm0, 1.0, %v2219_v26  ;;  %vm1468_vm0 = vcmask 761856  }
 0x156   : > { %v547_v10 = vpop.permute.xlu0 %546 }
 0x157   : > { %v549_v17 = vsub.f32 %v2475_v13, %v547_v10  ;;  %v564_v34 = vmax.f32 %v563_v25, %v547_v10 }
 0x159   : > { %v550_v28 = vmax.f32 %v549_v17, 0.0  ;;  %v421_v17 = vrot.slane %v420_v63, 4 }
 0x15a   : > { %v566_v33 = vpop.permute.xlu0 %565 }
 0x15b   : > { %v568_v39 = vsub.f32 %v564_v34, %v566_v33  ;;  %v422_v51 = vadd.f32 %v421_v17, %v420_v63  ;;  %v416_v34 = vrot.slane %v415_v7, 2 }
 0x15d   : > { %494 = vrot.lane.b32.xlu0 %v492_v4, %s2236_s16  ;;  %v569_v45 = vmax.f32 %v568_v39, 0.0  ;;  %v389_v4 = vsel %vm388_vm5, %v2572_v1, 0.0  ;;  %v423_v15 = vrot.slane %v422_v51, 2 }
 0x15e   : > { %v584_v18 = vpop.permute.xlu0 %583 }
 0x15f   : > { %v424_v39 = vadd.f32 %v423_v15, %v422_v51 }
 0x160   : > { %474 = vmax.xlane.f32.xlu1 %v473_v16 }
 0x161   : > { %535 = vrot.lane.b32.xlu0 %v533_v19, %s2229_s13  ;;  %v390_v19 = vrot.slane %v389_v4, 4  ;;  %s2248_s13 = smov 61  }
 0x163   : > { %v391_v2 = vadd.f32 %v390_v19, %v389_v4 }
 0x165   : > { %552 = vrot.lane.b32.xlu0 %v550_v28, %s2237_s19  ;;  %v407_v28 = vrot.slane %v406_v6, 4  ;;  %v392_v27 = vrot.slane %v391_v2, 2 }
 0x167   : > { %v408_v53 = vadd.f32 %v407_v28, %v406_v6 }
 0x169   : > { %v409_v33 = vrot.slane %v408_v53, 2 }
 0x171   : > { %513 = vrot.lane.b32.xlu1 %v511_v11, %s2238_s18 }
 0x173   : > { %v641_v42 = vpop.xlane.xlu1 %640 }
 0x174   : > { %v642_v38 = vsub.f32 %v641_v42, %v2475_v13  ;;  %v393_v42 = vadd.f32 %v392_v27, %v391_v2 }
 0x175   : > { %542 = vrot.lane.b32.xlu1 %v540_v37, %s2239_s20 }
 0x176   : > { %v643_v49 = vmax.f32 %v642_v38, 0.0 }
 0x177   : > { %v580_v57 = vpop.permute.xlu1 %579 }
 0x178   : > { %v582_v62 = vmax.f32 %v578_v44, %v580_v57  ;;  %v410_v44 = vadd.f32 %v409_v33, %v408_v53  ;;  %v2250_v57 = vmov 65  }
 0x179   : > { %571 = vrot.lane.b32.xlu1 %v569_v45, %s2240_s28  ;;  %v417_v45 = vadd.f32 %v416_v34, %v415_v7  ;;  %2015 = vset.pattern.permute.xlu0 %v2250_v57 }
 0x17a   : > { %v586_v22 = vmax.f32 %v582_v62, %v584_v18  ;;  %v425_v18 = vrot.slane %v424_v39, 1 }
 0x17b   : > { %v588_v24 = vpop.permute.xlu1 %587 }
 0x17c   : > { %v590_v8 = vsub.f32 %v586_v22, %v588_v24  ;;  %v411_v22 = vrot.slane %v410_v44, 1  ;;  %v418_v24 = vrot.slane %v417_v45, 1 }
 0x17e   : > { %v591_v12 = vmax.f32 %v590_v8, 0.0  ;;  %v838_v8 = vpop.f32.mrf.mxu0  ;;  %v419_v38 = vadd.f32 %v418_v24, %v417_v45 }
 0x17f   : > { %v598_v20 = vpop.permute.xlu1 %597  ;;  %vm1450_vm13 = vcmp.eq.f32.partialorder %v838_v8, 0.0 }
 0x180   : > { %593 = vrot.lane.b32.xlu0 %v591_v12, %s2241_s9  ;;  %v600_v30 = vmax.f32 %v2475_v13, %v598_v20  ;;  %v1451_v20 = vsel %vm1450_vm13, 1.0, %v2219_v26  ;;  %1471 = vst.msk [vmem:[%s2959_s29 + $0x2] sm:$0x1] %vm1468_vm0, %v419_v38 }
 0x184   : > { %626 = vrot.lane.b32.xlu0 %v624_v14, %s2242_s8  ;;  %v426_v14 = vadd.f32 %v425_v18, %v424_v39 }
 0x186   : > { %1476 = vst.msk [vmem:[%s2959_s29 + $0x7] sm:$0x1] %vm1468_vm0, %v426_v14 }
 0x18f   : > { %v670_v21 = vpop.xlane.xlu0 %669 }
 0x190   : > { %v671_v43 = vsub.f32 %v670_v21, %v2475_v13  ;;  %v1734_v21 = vpop.f32.mrf.mxu0 }
 0x192   : > { %v672_v50 = vmax.f32 %v671_v43, 0.0 }
 0x193   : > { %v602_v32 = vpop.permute.xlu0 %601 }
 0x194   : > { %v604_v36 = vsub.f32 %v600_v30, %v602_v32 }
 0x196   : > { %v605_v41 = vmax.f32 %v604_v36, 0.0  ;;  %v412_v36 = vadd.f32 %v411_v22, %v410_v44 }
 0x197   : > { %v698_v48 = vpop.permute.xlu0 %697 }
 0x198   : > { %607 = vrot.lane.b32.xlu1 %v605_v41, %s2243_s24  ;;  %v700_v54 = vsub.f32 %v2475_v13, %v698_v48  ;;  %v1453_v41 = vmul.f32 %v1614_v52, %v1451_v20  ;;  %1470 = vst.msk [vmem:[%s2959_s29 + $0x1] sm:$0x1] %vm1468_vm0, %v412_v36 }
 0x199   : > { %v944_v12 = vpop.f32.mrf.mxu1 }
 0x19a   : > { %v701_v56 = vmax.f32 %v700_v54, 0.0  ;;  %v1461_v3 = vrot.slane %v1453_v41, 4 }
 0x19b   : > { %v708_v55 = vpop.permute.xlu0 %707  ;;  %v1761_v30 = vpop.f32.mrf.mxu1 }
 0x19c   : > { %645 = vrot.lane.b32.xlu1 %v643_v49, %s2244_s14  ;;  %v710_v58 = vsub.f32 %v2475_v13, %v708_v55  ;;  %v1462_v49 = vadd.f32 %v1461_v3, %v1453_v41 }
 0x19e   : > { %v711_v60 = vmax.f32 %v710_v58, 0.0  ;;  %v1463_v54 = vrot.slane %v1462_v49, 2 }
 0x19f   : > { %v722_v46 = vpop.permute.xlu0 %721 }
 0x1a0   : > { %674 = vrot.lane.b32.xlu1 %v672_v50, %s2245_s27  ;;  %v724_v1 = vmax.f32 %v2475_v13, %v722_v46 }
 0x1a2   : > { %v725_v25 = vmax.f32 %v724_v1, %v2916_v23  ;;  %v394_v23 = vrot.slane %v393_v42, 1 }
 0x1a4   : > { %703 = vrot.lane.b32.xlu1 %v701_v56, %s2246_s10  ;;  %v395_v32 = vadd.f32 %v394_v23, %v393_v42  ;;  %v1464_v56 = vadd.f32 %v1463_v54, %v1462_v49 }
 0x1a6   : > { %1469 = vst.msk [vmem:[%s2959_s29] sm:$0x1] %vm1468_vm0, %v395_v32 }
 0x1a8   : > { %717 = vrot.lane.b32.xlu1 %v711_v60, %s2211_s26  ;;  %s2247_s26 = smov 34  }
 0x1b0   : > { %v689_v61 = vpop.xlane.xlu1 %688 }
 0x1b1   : > { %v690_v47 = vsub.f32 %v689_v61, %v2475_v13 }
 0x1b2   : > { %v1171_v58 = vpop.f32.mrf.mxu1 }
 0x1b3   : > { %v691_v59 = vmax.f32 %v690_v47, 0.0  ;;  %v1075_v43 = vpop.f32.mrf.mxu0 }
 0x1b4   : > { %v650_v10 = vpop.permute.xlu1 %649  ;;  %v1815_v61 = vpop.f32.mrf.mxu1  ;;  %v1076_v17 = vadd.f32 %v1075_v43, %v944_v12 }
 0x1b5   : > { %v652_v16 = vsub.f32 %v2475_v13, %v650_v10  ;;  %v1788_v48 = vpop.f32.mrf.mxu0 }
 0x1b7   : > { %v653_v29 = vmax.f32 %v652_v16, 0.0  ;;  %v1172_v16 = vadd.f32 %v1171_v58, %v1076_v17 }
 0x1b8   : > { %v727_v11 = vpop.permute.xlu1 %726 }
 0x1b9   : > { %655 = vrot.lane.b32.xlu0 %v653_v29, %s2247_s26  ;;  %v729_v37 = vsub.f32 %v725_v25, %v727_v11 }
 0x1bb   : > { %v730_v62 = vmax.f32 %v729_v37, 0.0 }
 0x1bd   : > { %693 = vrot.lane.b32.xlu0 %v691_v59, %s2248_s13 }
 0x1c1   : > { %713 = vrot.lane.b32.xlu0 %v711_v60, %s2249_s11  ;;  %v1465_v60 = vrot.slane %v1464_v56, 1 }
 0x1c3   : > { %v1466_v63 = vadd.f32 %v1465_v60, %v1464_v56 }
 0x1c5   : > { %732 = vrot.lane.b32.xlu0 %v730_v62, %s2251_s12  ;;  %1475 = vst [vmem:[%s2959_s29 + $0x6] sm:$0x1] %v1466_v63 }
 0x1cb   : > { %v1256_v4 = vpop.f32.mrf.mxu0 }
 0x1cc   : > { %v1257_v19 = vadd.f32 %v1256_v4, %v1172_v16 }
 0x1cd   : > { %v1842_v6 = vpop.f32.mrf.mxu0 }
 0x1d0   : > { %v2971_v50 = vpop.xlane.xlu0 %436 }
 0x1d1   : > { %v438_v55 = vsub.f32 %v2912_v35, %v2971_v50 }
 0x1d2   : > { %v1363_v28 = vpop.f32.mrf.mxu1 }
 0x1d3   : > { %v439_v26 = vmul.f32 1.442695, %v438_v55  ;;  %v1364_v35 = vadd.f32 %v1363_v28, %v1257_v19  ;;  %v444_v19 = vsub.f32 %v2467_v5, %v2971_v50 }
 0x1d4   : > { %v1869_v47 = vpop.f32.mrf.mxu1  ;;  %v495_v33 = vpop.permute.xlu0 %494 }
 0x1d5   : > { %2022 = vpow2.f32 %v439_v26 }
 0x1d8   : > { %v536_v42 = vpop.permute.xlu0 %535 }
 0x1dc   : > { %v553_v62 = vpop.permute.xlu0 %552 }
 0x1e2   : > { %v2023_v9 = vpop.eup %2022 }
 0x1e3   : > { %v441_v10 = vsel %vm388_vm5, %v2023_v9, 0.0  ;;  %v1446_v40 = vpop.f32.mrf.mxu0 }
 0x1e4   : > { %442 = vadd.xlane.f32.xlu1 %v441_v10  ;;  %v1447_v46 = vadd.f32 %v1446_v40, %v1364_v35 }
 0x1e5   : > { %v1896_v29 = vpop.f32.mrf.mxu0 }
 0x1e6   : > { %v1454_v51 = vmul.f32 %v1453_v41, %v1447_v46 }
 0x1e8   : > { %v1455_v1 = vrot.slane %v1454_v51, 4 }
 0x1e9   : > { %v475_v59 = vpop.xlane.xlu1 %474 }
 0x1ea   : > { %v1456_v2 = vadd.f32 %v1455_v1, %v1454_v51  ;;  %v476_v15 = vsub.f32 %v475_v59, %v2475_v13  ;;  %v745_v59 = vand.u32 127, %v346_v0 }
 0x1ec   : > { %v1457_v53 = vrot.slane %v1456_v2, 2  ;;  %v477_v27 = vmax.f32 %v476_v15, 0.0  ;;  %vm746_vm15 = vcmp.eq.s32.totalorder %v745_v59, 0 }
 0x1ed   : > { %v514_v37 = vpop.permute.xlu1 %513 }
 0x1ee   : > { %v1458_v7 = vadd.f32 %v1457_v53, %v1456_v2  ;;  %v497_v34 = vadd.f32 %v495_v33, %v477_v27 }
 0x1f0   : > { %v1459_v11 = vrot.slane %v1458_v7, 1  ;;  %v516_v39 = vadd.f32 %v514_v37, %v497_v34 }
 0x1f1   : > { %v543_v45 = vpop.permute.xlu1 %542 }
 0x1f2   : > { %v1460_v25 = vadd.f32 %v1459_v11, %v1458_v7  ;;  %v538_v44 = vadd.f32 %v536_v42, %v516_v39  ;;  %v594_v24 = vpop.permute.xlu0 %593 }
 0x1f4   : > { %1474 = vst [vmem:[%s2959_s29 + $0x5] sm:$0x1] %v1460_v25  ;;  %v545_v57 = vadd.f32 %v543_v45, %v538_v44 }
 0x1f5   : > { %v572_v23 = vpop.permute.xlu1 %571 }
 0x1f6   : > { %v555_v18 = vadd.f32 %v553_v62, %v545_v57  ;;  %v627_v13 = vpop.permute.xlu0 %626 }
 0x1f8   : > { %v574_v22 = vadd.f32 %v572_v23, %v555_v18 }
 0x1fa   : > { %v596_v52 = vadd.f32 %v594_v24, %v574_v22 }
 0x20a   : > { %v608_v8 = vpop.permute.xlu1 %607 }
 0x20b   : > { %v610_v12 = vadd.f32 %v608_v8, %v596_v52 }
 0x20d   : > { %v629_v14 = vadd.f32 %v627_v13, %v610_v12 }
 0x20e   : > { %v646_v20 = vpop.permute.xlu1 %645 }
 0x20f   : > { %v648_v21 = vadd.f32 %v646_v20, %v629_v14 }
 0x212   : > { %v675_v30 = vpop.permute.xlu1 %674 }
 0x216   : > { %v704_v41 = vpop.permute.xlu1 %703 }
 0x21a   : > { %v718_v55 = vpop.permute.xlu1 %717 }
 0x22b   : > { %v656_v32 = vpop.permute.xlu0 %655 }
 0x22c   : > { %v658_v36 = vadd.f32 %v656_v32, %v648_v21 }
 0x22e   : > { %v677_v38 = vadd.f32 %v675_v30, %v658_v36 }
 0x22f   : > { %v694_v43 = vpop.permute.xlu0 %693 }
 0x230   : > { %v696_v3 = vadd.f32 %v694_v43, %v677_v38 }
 0x232   : > { %v706_v48 = vadd.f32 %v704_v41, %v696_v3 }
 0x233   : > { %v714_v49 = vpop.permute.xlu0 %713 }
 0x234   : > { %v716_v54 = vadd.f32 %v714_v49, %v706_v48 }
 0x236   : > { %v720_v56 = vadd.f32 %v718_v55, %v716_v54 }
 0x237   : > { %v733_v26 = vpop.permute.xlu0 %732 }
 0x238   : > { %v735_v58 = vadd.f32 %v733_v26, %v720_v56 }
 0x23a   : > { %v737_v60 = vsel %vm736_vm14, %v735_v58, 0.0 }
 0x23b   : > { %v738_v61 = vrot.slane %v737_v60, 4 }
 0x23d   : > { %v739_v63 = vadd.f32 %v738_v61, %v737_v60 }
 0x23f   : > { %v740_v4 = vrot.slane %v739_v63, 2 }
 0x241   : > { %v741_v6 = vadd.f32 %v740_v4, %v739_v63 }
 0x243   : > { %v742_v9 = vrot.slane %v741_v6, 1 }
 0x245   : > { %v743_v10 = vadd.f32 %v742_v9, %v741_v6 }
 0x247   : > { %749 = vperm.xlu0 %2015, %v743_v10  }
 0x26d   : > { %v443_v17 = vpop.xlane.xlu1 %442 }
 0x26e   : > { %2024 = vlog2.f32 %v443_v17 }
 0x27b   : > { %v2025_v16 = vpop.eup %2024 }
 0x27c   : > { %v446_v28 = vmul.f32 0.6931472, %v2025_v16 }
 0x27e   : > { %v447_v35 = vsub.f32 %v444_v19, %v446_v28 }
 0x280   : > { %v455_v40 = vsub.f32 0.0, %v447_v35 }
 0x282   : > { %v456_v46 = vmul.f32 %v455_v40, %v2519_v31 }
 0x284   : > { %v457_v47 = vsel %vm388_vm5, %v456_v46, 0.0 }
 0x285   : > { %v458_v29 = vrot.slane %v457_v47, 4 }
 0x287   : > { %v459_v51 = vadd.f32 %v458_v29, %v457_v47 }
 0x289   : > { %v460_v1 = vrot.slane %v459_v51, 2 }
 0x28b   : > { %v461_v2 = vadd.f32 %v460_v1, %v459_v51 }
 0x28d   : > { %v462_v53 = vrot.slane %v461_v2, 1 }
 0x28f   : > { %v463_v7 = vadd.f32 %v462_v53, %v461_v2 }
 0x291   : > { %1472 = vst.msk [vmem:[%s2959_s29 + $0x3] sm:$0x1] %vm1468_vm0, %v463_v7 }
 0x2c2   : > { %v750_v5 = vpop.permute.xlu0 %749 }
 0x2c3   : > { %v752_v50 = vsel %vm746_vm15, %v750_v5, 0.0 }
 0x2c4   : > { %1473 = vst [vmem:[%s2959_s29 + $0x4] sm:$0x1] %v752_v50 }
 0x2c5 PF: > { %p18_p1 = scmp.ge.s32.totalorder %s2331_s7, 4   ;;  %s3048_s21 = smov %s2194_s22 }
 0x2c6   : > { %s3049_s22 = smov %s2198_s23  ;;  %s3050_s23 = smov %s2354_s15 }
 0x2c7   : > { %s3051_s24 = smov %s2331_s7  ;;  %20 = sbr.rel (!%p18_p1) target bundleno = 5 (0x5), region = 108 }
 0x2cc   :  { %1496 = vsyncpa [#allocation3], 1 }
 0x2cd   :  { %1498 = vsyncpa [#allocation3 + $0x1], 1 }
 0x2ce   :  { %1499 = vsyncpa [#allocation5], 1 }
 0x2cf   :  { %1500 = vsyncpa [#allocation8], 1 }
 0x2d0   :  { %1502 = vsyncpa [#allocation8 + $0x1], 1 }

</bundles_post_ra>
